<compile_context>
chip_gen: v7x
topology: tpu7x:2x2x1
jax: 0.10.0
libtpu: 0.0.40
codegen_flags: <defaults>
</compile_context>

<pallas_src>
import functools

import jax
import jax.numpy as jnp
import numpy as np
from jax.experimental import pallas as pl
from jax.experimental.pallas import tpu as pltpu


def _round_up(x, m):
    return (x + m - 1) // m * m


# ----------------------------------------------------------------------------
# Pallas kernel: the entire verlet forward pass (open conv, nlayer verlet steps,
# close conv) runs inside one kernel invocation, all operands VMEM-resident.
# ----------------------------------------------------------------------------
def _verlet_kernel(xn_ref, xe_ref, Gg_ref, Ga_ref,
                   KNopen_ref, KEopen_ref,
                   KE1_ref, KE2_ref, KN1_ref, KN2_ref,
                   KNclose_ref, KEclose_ref,
                   xn_out_ref, xe_out_ref,
                   *, h, nlayer, n_edge_elems, n_node_elems):
    f32 = jnp.float32

    def mm(a, b):
        # (M, K) @ (K, N) -> (M, N), f32 accumulation on the MXU.
        return jax.lax.dot_general(a, b, (((1,), (0,)), ((), ())),
                                   preferred_element_type=f32)

    def mm_t(a, b):
        # (M, K) x (N, K) contracting the shared last axis -> a @ b^T, (M, N).
        return jax.lax.dot_general(a, b, (((1,), (1,)), ((), ())),
                                   preferred_element_type=f32)

    def norm_relu(x, inv_count):
        # F.layer_norm(x, x.shape) (whole-tensor stats, eps=1e-5, no affine)
        # followed by ReLU.  One-pass statistics; zero padding contributes
        # nothing to the sums and inv_count uses the true element count.
        s = jnp.sum(x)
        s2 = jnp.sum(x * x)
        mu = s * inv_count
        var = jnp.maximum(s2 * inv_count - mu * mu, 0.0)
        return jnp.maximum((x - mu) * jax.lax.rsqrt(var + 1e-5), 0.0)

    Gg = Gg_ref[...]          # (Ep, Np) bf16 incidence (grad / div)
    Ga = Ga_ref[...]          # (Ep, Np) bf16 incidence (ave)

    inv_e = 1.0 / float(n_edge_elems)
    inv_n = 1.0 / float(n_node_elems)

    # Open 1x1 convs (block-diagonal weights -> single fused matmul per conv).
    xn = mm(KNopen_ref[...], xn_ref[...])     # (B*nopen, Np)
    xe = mm(KEopen_ref[...], xe_ref[...])     # (B*nopen, Ep)

    for i in range(nlayer):
        # ----- edge update -----
        xnb = xn.astype(jnp.bfloat16)
        AiG = mm_t(xnb, Gg)                   # nodeGrad -> (B*nopen, Ep)
        AiA = mm_t(xnb, Ga)                   # nodeAve  -> (B*nopen, Ep)
        # doubleLayer first conv: single matmul over stacked channels.
        t = mm(KE1_ref[i], jnp.concatenate([AiG, AiA], axis=0))  # (B*nhid, Ep)
        t = norm_relu(t, inv_e)
        xe = xe + h * mm(KE2_ref[i], t)       # (B*nopen, Ep)

        # ----- node update -----
        xeb = xe.astype(jnp.bfloat16)
        BiD = mm(xeb, Gg)                     # edgeDiv        -> (B*nopen, Np)
        BiA = mm(xeb, Ga)                     # edgeAve('ave') -> (B*nopen, Np)
        t = mm(KN1_ref[i], jnp.concatenate([BiD, BiA], axis=0))  # (B*nhid, Np)
        t = norm_relu(t, inv_n)
        xn = xn + h * mm(KN2_ref[i], t)       # (B*nopen, Np)

    # Close 1x1 convs.
    xn_out_ref[...] = mm(KNclose_ref[...], xn)
    xe_out_ref[...] = mm(KEclose_ref[...], xe)


# ----------------------------------------------------------------------------
# Wrapper: layout transforms, block-diagonal weights, dense incidence operators
# ----------------------------------------------------------------------------
def verlet_forward_pallas(xn, xe, iInd, jInd, params, h=0.1):
    KNopen, KEopen, KE1, KE2, KN1, KN2, KNclose, KEclose = params
    B, nNin, N = xn.shape
    _, nEin, E = xe.shape
    nlayer, nhid, two_nopen = KE1.shape
    nopen = two_nopen // 2
    nNout = KNclose.shape[0]
    nEout = KEclose.shape[0]

    Np = _round_up(N, 128)
    Ep = _round_up(E, 128)

    # Dense incidence operators (lane-padded, bf16 -- entries are 0/±0.5/±1):
    #   nodeGrad(x) = x @ Gg^T , nodeAve(x) = x @ Ga^T
    #   edgeDiv(g)  = g @ Gg   , edgeAve(g,'ave') = g @ Ga
    ee = jnp.arange(E)
    Gg = (jnp.zeros((Ep, Np), jnp.float32)
          .at[ee, iInd].add(1.0)
          .at[ee, jInd].add(-1.0)).astype(jnp.bfloat16)
    Ga = (jnp.zeros((Ep, Np), jnp.float32)
          .at[ee, iInd].add(0.5)
          .at[ee, jInd].add(0.5)).astype(jnp.bfloat16)

    # Batch-fused 2D activations, zero-padded to lane-dense width.
    xn2 = jnp.zeros((B * nNin, Np), jnp.float32).at[:, :N].set(xn.reshape(B * nNin, N))
    xe2 = jnp.zeros((B * nEin, Ep), jnp.float32).at[:, :E].set(xe.reshape(B * nEin, E))

    # Block-diagonal conv weights: conv1d(x, K) over (B, C, L) == kron(I_B, K) @ x2.
    eyeB = jnp.eye(B, dtype=jnp.float32)
    blk = lambda K: jnp.kron(eyeB, K)
    # K1 acts on cat(featA, featB) along channels; with the two features stacked
    # as [featA(all batches); featB(all batches)] the matching weight is
    # [kron(I,K1[:, :nopen]) | kron(I,K1[:, nopen:])].
    def blk_cat(K1):
        return jnp.concatenate([blk(K1[:, :nopen]), blk(K1[:, nopen:])], axis=1)

    KE1_blk = jnp.stack([blk_cat(KE1[i]) for i in range(nlayer)])   # (L, B*nhid, 2*B*nopen)
    KE2_blk = jnp.stack([blk(KE2[i]) for i in range(nlayer)])       # (L, B*nopen, B*nhid)
    KN1_blk = jnp.stack([blk_cat(KN1[i]) for i in range(nlayer)])
    KN2_blk = jnp.stack([blk(KN2[i]) for i in range(nlayer)])
    KNopen_blk = blk(KNopen)
    KEopen_blk = blk(KEopen)
    KNclose_blk = blk(KNclose)
    KEclose_blk = blk(KEclose)

    operands = (xn2, xe2, Gg, Ga, KNopen_blk, KEopen_blk,
                KE1_blk, KE2_blk, KN1_blk, KN2_blk, KNclose_blk, KEclose_blk)

    # Size the scoped VMEM limit from the actual buffers (with headroom), kept
    # within safe bounds on every TPU generation.
    in_bytes = sum(int(np.prod(a.shape)) * jnp.dtype(a.dtype).itemsize for a in operands)
    out_bytes = (B * nNout * Np + B * nEout * Ep) * 4
    vmem_limit = int(min(32 * 1024 * 1024,
                         max(16 * 1024 * 1024, 4 * (in_bytes + out_bytes))))

    kernel = functools.partial(_verlet_kernel, h=h, nlayer=nlayer,
                               n_edge_elems=B * nhid * E,
                               n_node_elems=B * nhid * N)
    vmem = pl.BlockSpec(memory_space=pltpu.MemorySpace.VMEM)

    xn_out2, xe_out2 = pl.pallas_call(
        kernel,
        out_shape=(jax.ShapeDtypeStruct((B * nNout, Np), jnp.float32),
                   jax.ShapeDtypeStruct((B * nEout, Ep), jnp.float32)),
        in_specs=[vmem] * len(operands),
        out_specs=(vmem, vmem),
        compiler_params=pltpu.CompilerParams(vmem_limit_bytes=vmem_limit),
    )(*operands)

    xn_out = xn_out2.reshape(B, nNout, Np)[:, :, :N]
    xe_out = xe_out2.reshape(B, nEout, Ep)[:, :, :E]
    return xn_out, xe_out


# ----------------------------------------------------------------------------
# Pure-JAX reference (mirrors the PyTorch code: gathers / scatter-adds / concat)
# ----------------------------------------------------------------------------
def verlet_forward_ref(xn, xe, iInd, jInd, params, h=0.1):
    KNopen, KEopen, KE1, KE2, KN1, KN2, KNclose, KEclose = params
    N = xn.shape[-1]
    prec = jax.lax.Precision.HIGHEST

    def conv(x, K):
        return jnp.einsum('oi,bil->bol', K, x, precision=prec)

    def layer_norm_all(x):
        mu = jnp.mean(x)
        var = jnp.mean((x - mu) ** 2)
        return (x - mu) / jnp.sqrt(var + 1e-5)

    def double_layer(x, K1, K2):
        x = conv(x, K1)
        x = layer_norm_all(x)
        x = jnp.maximum(x, 0.0)
        return conv(x, K2)

    def node_grad(x):
        return x[:, :, iInd] - x[:, :, jInd]

    def node_ave(x):
        return (x[:, :, iInd] + x[:, :, jInd]) / 2.0

    def edge_div(g):
        z = jnp.zeros(g.shape[:2] + (N,), g.dtype)
        return z.at[:, :, iInd].add(g).at[:, :, jInd].add(-g)

    def edge_ave(g):
        z = jnp.zeros(g.shape[:2] + (N,), g.dtype)
        x1 = z.at[:, :, iInd].add(g)
        x2 = z.at[:, :, jInd].add(g)
        return (x1 + x2) / 2.0

    xn = conv(xn, KNopen)
    xe = conv(xe, KEopen)
    for i in range(KN1.shape[0]):
        Ai = jnp.concatenate((node_grad(xn), node_ave(xn)), axis=1)
        Ai = double_layer(Ai, KE1[i], KE2[i])
        xe = xe + h * Ai
        Bi = jnp.concatenate((edge_div(xe), edge_ave(xe)), axis=1)
        Bi = double_layer(Bi, KN1[i], KN2[i])
        xn = xn + h * Bi
    return conv(xn, KNclose), conv(xe, KEclose)


# ----------------------------------------------------------------------------
if __name__ == "__main__":
    # Small shapes consistent with the module's forward.
    B, N, E = 2, 16, 24
    nNin, nEin = 4, 3
    nopen, nhid = 8, 16
    nNout, nEout = 5, 6
    nlayer = 2
    h = 0.1
    stdv = 0.001

    key = jax.random.PRNGKey(0)
    ks = jax.random.split(key, 10)
    params = (
        jax.random.normal(ks[0], (nopen, nNin), jnp.float32) * stdv,              # KNopen
        jax.random.normal(ks[1], (nopen, nEin), jnp.float32) * stdv,              # KEopen
        jax.random.normal(ks[2], (nlayer, nhid, 2 * nopen), jnp.float32) * stdv,  # KE1
        jax.random.normal(ks[3], (nlayer, nopen, nhid), jnp.float32) * stdv,      # KE2
        jax.random.normal(ks[4], (nlayer, nhid, 2 * nopen), jnp.float32) * stdv,  # KN1
        jax.random.normal(ks[5], (nlayer, nopen, nhid), jnp.float32) * stdv,      # KN2
        jax.random.normal(ks[6], (nNout, nopen), jnp.float32) * stdv,             # KNclose
        jax.random.normal(ks[7], (nEout, nopen), jnp.float32) * stdv,             # KEclose
    )

    xn = jax.random.normal(ks[8], (B, nNin, N), jnp.float32)
    xe = jax.random.normal(ks[9], (B, nEin, E), jnp.float32)

    # Deterministic synthetic graph connectivity (edge endpoint indices).
    iInd = jnp.arange(E, dtype=jnp.int32) % N
    jInd = (jnp.arange(E, dtype=jnp.int32) + 5) % N

    xn_out, xe_out = verlet_forward_pallas(xn, xe, iInd, jInd, params, h=h)
    jax.block_until_ready((xn_out, xe_out))

    xn_ref, xe_ref = verlet_forward_ref(xn, xe, iInd, jInd, params, h=h)
    np.testing.assert_allclose(np.asarray(xn_out), np.asarray(xn_ref), rtol=2e-2, atol=1e-5)
    np.testing.assert_allclose(np.asarray(xe_out), np.asarray(xe_ref), rtol=2e-2, atol=1e-5)

    print("KERNEL_OK")
</pallas_src>

<mosaic_0001>
module attributes {stable_mosaic.version = 11 : i64} {
  func.func @_verlet_kernel(%arg0: memref<8x128xf32, #tpu.memory_space<vmem>>, %arg1: memref<6x128xf32, #tpu.memory_space<vmem>>, %arg2: memref<128x128xbf16, #tpu.memory_space<vmem>>, %arg3: memref<128x128xbf16, #tpu.memory_space<vmem>>, %arg4: memref<16x8xf32, #tpu.memory_space<vmem>>, %arg5: memref<16x6xf32, #tpu.memory_space<vmem>>, %arg6: memref<2x32x32xf32, #tpu.memory_space<vmem>>, %arg7: memref<2x16x32xf32, #tpu.memory_space<vmem>>, %arg8: memref<2x32x32xf32, #tpu.memory_space<vmem>>, %arg9: memref<2x16x32xf32, #tpu.memory_space<vmem>>, %arg10: memref<10x16xf32, #tpu.memory_space<vmem>>, %arg11: memref<12x16xf32, #tpu.memory_space<vmem>>, %arg12: memref<10x128xf32, #tpu.memory_space<vmem>>, %arg13: memref<12x128xf32, #tpu.memory_space<vmem>>) attributes {dimension_semantics = [], scalar_prefetch = 0 : i64, scratch_operands = 0 : i64, tpu.core_type = #tpu.core_type<tc>} {
    %c0 = arith.constant 0 : index
    %c0_0 = arith.constant 0 : index
    %0 = vector.load %arg2[%c0, %c0_0] : memref<128x128xbf16, #tpu.memory_space<vmem>>, vector<128x128xbf16>
    %c0_1 = arith.constant 0 : index
    %c0_2 = arith.constant 0 : index
    %1 = vector.load %arg3[%c0_1, %c0_2] : memref<128x128xbf16, #tpu.memory_space<vmem>>, vector<128x128xbf16>
    %c0_3 = arith.constant 0 : index
    %c0_4 = arith.constant 0 : index
    %2 = vector.load %arg4[%c0_3, %c0_4] : memref<16x8xf32, #tpu.memory_space<vmem>>, vector<16x8xf32>
    %c0_5 = arith.constant 0 : index
    %c0_6 = arith.constant 0 : index
    %3 = vector.load %arg0[%c0_5, %c0_6] : memref<8x128xf32, #tpu.memory_space<vmem>>, vector<8x128xf32>
    %cst = arith.constant dense<0.000000e+00> : vector<16x128xf32>
    %4 = tpu.matmul %2, %3, %cst {dimension_numbers = #tpu.dot_dimension_numbers<[1], [0], [0], [1], [0, 0, 1, 1], [], []>} : vector<16x8xf32>, vector<8x128xf32>, vector<16x128xf32> -> vector<16x128xf32>
    %c0_7 = arith.constant 0 : index
    %c0_8 = arith.constant 0 : index
    %5 = vector.load %arg5[%c0_7, %c0_8] : memref<16x6xf32, #tpu.memory_space<vmem>>, vector<16x6xf32>
    %c0_9 = arith.constant 0 : index
    %c0_10 = arith.constant 0 : index
    %6 = vector.load %arg1[%c0_9, %c0_10] : memref<6x128xf32, #tpu.memory_space<vmem>>, vector<6x128xf32>
    %cst_11 = arith.constant dense<0.000000e+00> : vector<16x128xf32>
    %7 = tpu.matmul %5, %6, %cst_11 {dimension_numbers = #tpu.dot_dimension_numbers<[1], [0], [0], [1], [0, 0, 1, 1], [], []>} : vector<16x6xf32>, vector<6x128xf32>, vector<16x128xf32> -> vector<16x128xf32>
    %8 = arith.truncf %4 : vector<16x128xf32> to vector<16x128xbf16>
    %cst_12 = arith.constant dense<0.000000e+00> : vector<16x128xf32>
    %9 = tpu.matmul %8, %0, %cst_12 {dimension_numbers = #tpu.dot_dimension_numbers<[1], [1], [0], [0], [0, 0, 1, 0], [], []>} : vector<16x128xbf16>, vector<128x128xbf16>, vector<16x128xf32> -> vector<16x128xf32>
    %cst_13 = arith.constant dense<0.000000e+00> : vector<16x128xf32>
    %10 = tpu.matmul %8, %1, %cst_13 {dimension_numbers = #tpu.dot_dimension_numbers<[1], [1], [0], [0], [0, 0, 1, 0], [], []>} : vector<16x128xbf16>, vector<128x128xbf16>, vector<16x128xf32> -> vector<16x128xf32>
    %c0_14 = arith.constant 0 : index
    %c0_15 = arith.constant 0 : index
    %c0_16 = arith.constant 0 : index
    %11 = vector.load %arg6[%c0_14, %c0_15, %c0_16] : memref<2x32x32xf32, #tpu.memory_space<vmem>>, vector<1x32x32xf32>
    %12 = vector.shape_cast %11 : vector<1x32x32xf32> to vector<32x32xf32>
    %13 = tpu.concatenate %9, %10 in 0 : vector<16x128xf32>, vector<16x128xf32> -> vector<32x128xf32>
    %cst_17 = arith.constant dense<0.000000e+00> : vector<32x128xf32>
    %14 = tpu.matmul %12, %13, %cst_17 {dimension_numbers = #tpu.dot_dimension_numbers<[1], [0], [0], [1], [0, 0, 1, 1], [], []>} : vector<32x32xf32>, vector<32x128xf32>, vector<32x128xf32> -> vector<32x128xf32>
    %15 = vector.shape_cast %14 : vector<32x128xf32> to vector<1x32x128xf32>
    %cst_18 = arith.constant dense<0.000000e+00> : vector<1xf32>
    %16 = vector.multi_reduction <add>, %15, %cst_18 [1, 2] : vector<1x32x128xf32> to vector<1xf32>
    %17 = vector.shape_cast %16 : vector<1xf32> to vector<1x1x1xf32>
    %18 = vector.extract %17[0, 0, 0] : f32 from vector<1x1x1xf32>
    %19 = arith.mulf %14, %14 : vector<32x128xf32>
    %20 = vector.shape_cast %19 : vector<32x128xf32> to vector<1x32x128xf32>
    %cst_19 = arith.constant dense<0.000000e+00> : vector<1xf32>
    %21 = vector.multi_reduction <add>, %20, %cst_19 [1, 2] : vector<1x32x128xf32> to vector<1xf32>
    %22 = vector.shape_cast %21 : vector<1xf32> to vector<1x1x1xf32>
    %23 = vector.extract %22[0, 0, 0] : f32 from vector<1x1x1xf32>
    %cst_20 = arith.constant 0.00130208337 : f32
    %24 = arith.mulf %18, %cst_20 : f32
    %cst_21 = arith.constant 0.00130208337 : f32
    %25 = arith.mulf %23, %cst_21 : f32
    %26 = arith.mulf %24, %24 : f32
    %27 = arith.subf %25, %26 : f32
    %cst_22 = arith.constant 0.000000e+00 : f32
    %28 = arith.maximumf %27, %cst_22 : f32
    %29 = vector.broadcast %24 : f32 to vector<32x128xf32>
    %30 = arith.subf %14, %29 : vector<32x128xf32>
    %cst_23 = arith.constant 9.99999974E-6 : f32
    %31 = arith.addf %28, %cst_23 : f32
    %32 = math.rsqrt %31 : f32
    %33 = vector.broadcast %32 : f32 to vector<32x128xf32>
    %34 = arith.mulf %30, %33 : vector<32x128xf32>
    %cst_24 = arith.constant 0.000000e+00 : f32
    %35 = vector.broadcast %cst_24 : f32 to vector<32x128xf32>
    %36 = arith.maximumf %34, %35 : vector<32x128xf32>
    %c0_25 = arith.constant 0 : index
    %c0_26 = arith.constant 0 : index
    %c0_27 = arith.constant 0 : index
    %37 = vector.load %arg7[%c0_25, %c0_26, %c0_27] : memref<2x16x32xf32, #tpu.memory_space<vmem>>, vector<1x16x32xf32>
    %38 = vector.shape_cast %37 : vector<1x16x32xf32> to vector<16x32xf32>
    %cst_28 = arith.constant dense<0.000000e+00> : vector<16x128xf32>
    %39 = tpu.matmul %38, %36, %cst_28 {dimension_numbers = #tpu.dot_dimension_numbers<[1], [0], [0], [1], [0, 0, 1, 1], [], []>} : vector<16x32xf32>, vector<32x128xf32>, vector<16x128xf32> -> vector<16x128xf32>
    %cst_29 = arith.constant 1.000000e-01 : f32
    %40 = vector.broadcast %cst_29 : f32 to vector<16x128xf32>
    %41 = arith.mulf %40, %39 : vector<16x128xf32>
    %42 = arith.addf %7, %41 : vector<16x128xf32>
    %43 = arith.truncf %42 : vector<16x128xf32> to vector<16x128xbf16>
    %cst_30 = arith.constant dense<0.000000e+00> : vector<16x128xf32>
    %44 = tpu.matmul %43, %0, %cst_30 {dimension_numbers = #tpu.dot_dimension_numbers<[1], [0], [0], [1], [0, 0, 1, 1], [], []>} : vector<16x128xbf16>, vector<128x128xbf16>, vector<16x128xf32> -> vector<16x128xf32>
    %cst_31 = arith.constant dense<0.000000e+00> : vector<16x128xf32>
    %45 = tpu.matmul %43, %1, %cst_31 {dimension_numbers = #tpu.dot_dimension_numbers<[1], [0], [0], [1], [0, 0, 1, 1], [], []>} : vector<16x128xbf16>, vector<128x128xbf16>, vector<16x128xf32> -> vector<16x128xf32>
    %c0_32 = arith.constant 0 : index
    %c0_33 = arith.constant 0 : index
    %c0_34 = arith.constant 0 : index
    %46 = vector.load %arg8[%c0_32, %c0_33, %c0_34] : memref<2x32x32xf32, #tpu.memory_space<vmem>>, vector<1x32x32xf32>
    %47 = vector.shape_cast %46 : vector<1x32x32xf32> to vector<32x32xf32>
    %48 = tpu.concatenate %44, %45 in 0 : vector<16x128xf32>, vector<16x128xf32> -> vector<32x128xf32>
    %cst_35 = arith.constant dense<0.000000e+00> : vector<32x128xf32>
    %49 = tpu.matmul %47, %48, %cst_35 {dimension_numbers = #tpu.dot_dimension_numbers<[1], [0], [0], [1], [0, 0, 1, 1], [], []>} : vector<32x32xf32>, vector<32x128xf32>, vector<32x128xf32> -> vector<32x128xf32>
    %50 = vector.shape_cast %49 : vector<32x128xf32> to vector<1x32x128xf32>
    %cst_36 = arith.constant dense<0.000000e+00> : vector<1xf32>
    %51 = vector.multi_reduction <add>, %50, %cst_36 [1, 2] : vector<1x32x128xf32> to vector<1xf32>
    %52 = vector.shape_cast %51 : vector<1xf32> to vector<1x1x1xf32>
    %53 = vector.extract %52[0, 0, 0] : f32 from vector<1x1x1xf32>
    %54 = arith.mulf %49, %49 : vector<32x128xf32>
    %55 = vector.shape_cast %54 : vector<32x128xf32> to vector<1x32x128xf32>
    %cst_37 = arith.constant dense<0.000000e+00> : vector<1xf32>
    %56 = vector.multi_reduction <add>, %55, %cst_37 [1, 2] : vector<1x32x128xf32> to vector<1xf32>
    %57 = vector.shape_cast %56 : vector<1xf32> to vector<1x1x1xf32>
    %58 = vector.extract %57[0, 0, 0] : f32 from vector<1x1x1xf32>
    %cst_38 = arith.constant 0.001953125 : f32
    %59 = arith.mulf %53, %cst_38 : f32
    %cst_39 = arith.constant 0.001953125 : f32
    %60 = arith.mulf %58, %cst_39 : f32
    %61 = arith.mulf %59, %59 : f32
    %62 = arith.subf %60, %61 : f32
    %cst_40 = arith.constant 0.000000e+00 : f32
    %63 = arith.maximumf %62, %cst_40 : f32
    %64 = vector.broadcast %59 : f32 to vector<32x128xf32>
    %65 = arith.subf %49, %64 : vector<32x128xf32>
    %cst_41 = arith.constant 9.99999974E-6 : f32
    %66 = arith.addf %63, %cst_41 : f32
    %67 = math.rsqrt %66 : f32
    %68 = vector.broadcast %67 : f32 to vector<32x128xf32>
    %69 = arith.mulf %65, %68 : vector<32x128xf32>
    %cst_42 = arith.constant 0.000000e+00 : f32
    %70 = vector.broadcast %cst_42 : f32 to vector<32x128xf32>
    %71 = arith.maximumf %69, %70 : vector<32x128xf32>
    %c0_43 = arith.constant 0 : index
    %c0_44 = arith.constant 0 : index
    %c0_45 = arith.constant 0 : index
    %72 = vector.load %arg9[%c0_43, %c0_44, %c0_45] : memref<2x16x32xf32, #tpu.memory_space<vmem>>, vector<1x16x32xf32>
    %73 = vector.shape_cast %72 : vector<1x16x32xf32> to vector<16x32xf32>
    %cst_46 = arith.constant dense<0.000000e+00> : vector<16x128xf32>
    %74 = tpu.matmul %73, %71, %cst_46 {dimension_numbers = #tpu.dot_dimension_numbers<[1], [0], [0], [1], [0, 0, 1, 1], [], []>} : vector<16x32xf32>, vector<32x128xf32>, vector<16x128xf32> -> vector<16x128xf32>
    %cst_47 = arith.constant 1.000000e-01 : f32
    %75 = vector.broadcast %cst_47 : f32 to vector<16x128xf32>
    %76 = arith.mulf %75, %74 : vector<16x128xf32>
    %77 = arith.addf %4, %76 : vector<16x128xf32>
    %78 = arith.truncf %77 : vector<16x128xf32> to vector<16x128xbf16>
    %cst_48 = arith.constant dense<0.000000e+00> : vector<16x128xf32>
    %79 = tpu.matmul %78, %0, %cst_48 {dimension_numbers = #tpu.dot_dimension_numbers<[1], [1], [0], [0], [0, 0, 1, 0], [], []>} : vector<16x128xbf16>, vector<128x128xbf16>, vector<16x128xf32> -> vector<16x128xf32>
    %cst_49 = arith.constant dense<0.000000e+00> : vector<16x128xf32>
    %80 = tpu.matmul %78, %1, %cst_49 {dimension_numbers = #tpu.dot_dimension_numbers<[1], [1], [0], [0], [0, 0, 1, 0], [], []>} : vector<16x128xbf16>, vector<128x128xbf16>, vector<16x128xf32> -> vector<16x128xf32>
    %c1 = arith.constant 1 : index
    %c0_50 = arith.constant 0 : index
    %c0_51 = arith.constant 0 : index
    %81 = vector.load %arg6[%c1, %c0_50, %c0_51] : memref<2x32x32xf32, #tpu.memory_space<vmem>>, vector<1x32x32xf32>
    %82 = vector.shape_cast %81 : vector<1x32x32xf32> to vector<32x32xf32>
    %83 = tpu.concatenate %79, %80 in 0 : vector<16x128xf32>, vector<16x128xf32> -> vector<32x128xf32>
    %cst_52 = arith.constant dense<0.000000e+00> : vector<32x128xf32>
    %84 = tpu.matmul %82, %83, %cst_52 {dimension_numbers = #tpu.dot_dimension_numbers<[1], [0], [0], [1], [0, 0, 1, 1], [], []>} : vector<32x32xf32>, vector<32x128xf32>, vector<32x128xf32> -> vector<32x128xf32>
    %85 = vector.shape_cast %84 : vector<32x128xf32> to vector<1x32x128xf32>
    %cst_53 = arith.constant dense<0.000000e+00> : vector<1xf32>
    %86 = vector.multi_reduction <add>, %85, %cst_53 [1, 2] : vector<1x32x128xf32> to vector<1xf32>
    %87 = vector.shape_cast %86 : vector<1xf32> to vector<1x1x1xf32>
    %88 = vector.extract %87[0, 0, 0] : f32 from vector<1x1x1xf32>
    %89 = arith.mulf %84, %84 : vector<32x128xf32>
    %90 = vector.shape_cast %89 : vector<32x128xf32> to vector<1x32x128xf32>
    %cst_54 = arith.constant dense<0.000000e+00> : vector<1xf32>
    %91 = vector.multi_reduction <add>, %90, %cst_54 [1, 2] : vector<1x32x128xf32> to vector<1xf32>
    %92 = vector.shape_cast %91 : vector<1xf32> to vector<1x1x1xf32>
    %93 = vector.extract %92[0, 0, 0] : f32 from vector<1x1x1xf32>
    %cst_55 = arith.constant 0.00130208337 : f32
    %94 = arith.mulf %88, %cst_55 : f32
    %cst_56 = arith.constant 0.00130208337 : f32
    %95 = arith.mulf %93, %cst_56 : f32
    %96 = arith.mulf %94, %94 : f32
    %97 = arith.subf %95, %96 : f32
    %cst_57 = arith.constant 0.000000e+00 : f32
    %98 = arith.maximumf %97, %cst_57 : f32
    %99 = vector.broadcast %94 : f32 to vector<32x128xf32>
    %100 = arith.subf %84, %99 : vector<32x128xf32>
    %cst_58 = arith.constant 9.99999974E-6 : f32
    %101 = arith.addf %98, %cst_58 : f32
    %102 = math.rsqrt %101 : f32
    %103 = vector.broadcast %102 : f32 to vector<32x128xf32>
    %104 = arith.mulf %100, %103 : vector<32x128xf32>
    %cst_59 = arith.constant 0.000000e+00 : f32
    %105 = vector.broadcast %cst_59 : f32 to vector<32x128xf32>
    %106 = arith.maximumf %104, %105 : vector<32x128xf32>
    %c1_60 = arith.constant 1 : index
    %c0_61 = arith.constant 0 : index
    %c0_62 = arith.constant 0 : index
    %107 = vector.load %arg7[%c1_60, %c0_61, %c0_62] : memref<2x16x32xf32, #tpu.memory_space<vmem>>, vector<1x16x32xf32>
    %108 = vector.shape_cast %107 : vector<1x16x32xf32> to vector<16x32xf32>
    %cst_63 = arith.constant dense<0.000000e+00> : vector<16x128xf32>
    %109 = tpu.matmul %108, %106, %cst_63 {dimension_numbers = #tpu.dot_dimension_numbers<[1], [0], [0], [1], [0, 0, 1, 1], [], []>} : vector<16x32xf32>, vector<32x128xf32>, vector<16x128xf32> -> vector<16x128xf32>
    %cst_64 = arith.constant 1.000000e-01 : f32
    %110 = vector.broadcast %cst_64 : f32 to vector<16x128xf32>
    %111 = arith.mulf %110, %109 : vector<16x128xf32>
    %112 = arith.addf %42, %111 : vector<16x128xf32>
    %113 = arith.truncf %112 : vector<16x128xf32> to vector<16x128xbf16>
    %cst_65 = arith.constant dense<0.000000e+00> : vector<16x128xf32>
    %114 = tpu.matmul %113, %0, %cst_65 {dimension_numbers = #tpu.dot_dimension_numbers<[1], [0], [0], [1], [0, 0, 1, 1], [], []>} : vector<16x128xbf16>, vector<128x128xbf16>, vector<16x128xf32> -> vector<16x128xf32>
    %cst_66 = arith.constant dense<0.000000e+00> : vector<16x128xf32>
    %115 = tpu.matmul %113, %1, %cst_66 {dimension_numbers = #tpu.dot_dimension_numbers<[1], [0], [0], [1], [0, 0, 1, 1], [], []>} : vector<16x128xbf16>, vector<128x128xbf16>, vector<16x128xf32> -> vector<16x128xf32>
    %c1_67 = arith.constant 1 : index
    %c0_68 = arith.constant 0 : index
    %c0_69 = arith.constant 0 : index
    %116 = vector.load %arg8[%c1_67, %c0_68, %c0_69] : memref<2x32x32xf32, #tpu.memory_space<vmem>>, vector<1x32x32xf32>
    %117 = vector.shape_cast %116 : vector<1x32x32xf32> to vector<32x32xf32>
    %118 = tpu.concatenate %114, %115 in 0 : vector<16x128xf32>, vector<16x128xf32> -> vector<32x128xf32>
    %cst_70 = arith.constant dense<0.000000e+00> : vector<32x128xf32>
    %119 = tpu.matmul %117, %118, %cst_70 {dimension_numbers = #tpu.dot_dimension_numbers<[1], [0], [0], [1], [0, 0, 1, 1], [], []>} : vector<32x32xf32>, vector<32x128xf32>, vector<32x128xf32> -> vector<32x128xf32>
    %120 = vector.shape_cast %119 : vector<32x128xf32> to vector<1x32x128xf32>
    %cst_71 = arith.constant dense<0.000000e+00> : vector<1xf32>
    %121 = vector.multi_reduction <add>, %120, %cst_71 [1, 2] : vector<1x32x128xf32> to vector<1xf32>
    %122 = vector.shape_cast %121 : vector<1xf32> to vector<1x1x1xf32>
    %123 = vector.extract %122[0, 0, 0] : f32 from vector<1x1x1xf32>
    %124 = arith.mulf %119, %119 : vector<32x128xf32>
    %125 = vector.shape_cast %124 : vector<32x128xf32> to vector<1x32x128xf32>
    %cst_72 = arith.constant dense<0.000000e+00> : vector<1xf32>
    %126 = vector.multi_reduction <add>, %125, %cst_72 [1, 2] : vector<1x32x128xf32> to vector<1xf32>
    %127 = vector.shape_cast %126 : vector<1xf32> to vector<1x1x1xf32>
    %128 = vector.extract %127[0, 0, 0] : f32 from vector<1x1x1xf32>
    %cst_73 = arith.constant 0.001953125 : f32
    %129 = arith.mulf %123, %cst_73 : f32
    %cst_74 = arith.constant 0.001953125 : f32
    %130 = arith.mulf %128, %cst_74 : f32
    %131 = arith.mulf %129, %129 : f32
    %132 = arith.subf %130, %131 : f32
    %cst_75 = arith.constant 0.000000e+00 : f32
    %133 = arith.maximumf %132, %cst_75 : f32
    %134 = vector.broadcast %129 : f32 to vector<32x128xf32>
    %135 = arith.subf %119, %134 : vector<32x128xf32>
    %cst_76 = arith.constant 9.99999974E-6 : f32
    %136 = arith.addf %133, %cst_76 : f32
    %137 = math.rsqrt %136 : f32
    %138 = vector.broadcast %137 : f32 to vector<32x128xf32>
    %139 = arith.mulf %135, %138 : vector<32x128xf32>
    %cst_77 = arith.constant 0.000000e+00 : f32
    %140 = vector.broadcast %cst_77 : f32 to vector<32x128xf32>
    %141 = arith.maximumf %139, %140 : vector<32x128xf32>
    %c1_78 = arith.constant 1 : index
    %c0_79 = arith.constant 0 : index
    %c0_80 = arith.constant 0 : index
    %142 = vector.load %arg9[%c1_78, %c0_79, %c0_80] : memref<2x16x32xf32, #tpu.memory_space<vmem>>, vector<1x16x32xf32>
    %143 = vector.shape_cast %142 : vector<1x16x32xf32> to vector<16x32xf32>
    %cst_81 = arith.constant dense<0.000000e+00> : vector<16x128xf32>
    %144 = tpu.matmul %143, %141, %cst_81 {dimension_numbers = #tpu.dot_dimension_numbers<[1], [0], [0], [1], [0, 0, 1, 1], [], []>} : vector<16x32xf32>, vector<32x128xf32>, vector<16x128xf32> -> vector<16x128xf32>
    %cst_82 = arith.constant 1.000000e-01 : f32
    %145 = vector.broadcast %cst_82 : f32 to vector<16x128xf32>
    %146 = arith.mulf %145, %144 : vector<16x128xf32>
    %147 = arith.addf %77, %146 : vector<16x128xf32>
    %c0_83 = arith.constant 0 : index
    %c0_84 = arith.constant 0 : index
    %148 = vector.load %arg10[%c0_83, %c0_84] : memref<10x16xf32, #tpu.memory_space<vmem>>, vector<10x16xf32>
    %cst_85 = arith.constant dense<0.000000e+00> : vector<10x128xf32>
    %149 = tpu.matmul %148, %147, %cst_85 {dimension_numbers = #tpu.dot_dimension_numbers<[1], [0], [0], [1], [0, 0, 1, 1], [], []>} : vector<10x16xf32>, vector<16x128xf32>, vector<10x128xf32> -> vector<10x128xf32>
    %c0_86 = arith.constant 0 : index
    %c0_87 = arith.constant 0 : index
    %150 = vector.load %arg12[%c0_86, %c0_87] : memref<10x128xf32, #tpu.memory_space<vmem>>, vector<10x128xf32>
    tpu.vector_store %arg12[%c0_86, %c0_87], %149 {strides = array<i32>} : memref<10x128xf32, #tpu.memory_space<vmem>>, vector<10x128xf32>,
    %c0_88 = arith.constant 0 : index
    %c0_89 = arith.constant 0 : index
    %151 = vector.load %arg11[%c0_88, %c0_89] : memref<12x16xf32, #tpu.memory_space<vmem>>, vector<12x16xf32>
    %cst_90 = arith.constant dense<0.000000e+00> : vector<12x128xf32>
    %152 = tpu.matmul %151, %112, %cst_90 {dimension_numbers = #tpu.dot_dimension_numbers<[1], [0], [0], [1], [0, 0, 1, 1], [], []>} : vector<12x16xf32>, vector<16x128xf32>, vector<12x128xf32> -> vector<12x128xf32>
    %c0_91 = arith.constant 0 : index
    %c0_92 = arith.constant 0 : index
    %153 = vector.load %arg13[%c0_91, %c0_92] : memref<12x128xf32, #tpu.memory_space<vmem>>, vector<12x128xf32>
    tpu.vector_store %arg13[%c0_91, %c0_92], %152 {strides = array<i32>} : memref<12x128xf32, #tpu.memory_space<vmem>>, vector<12x128xf32>,
    return
  }
}

</mosaic_0001>

<bundles_post_ra>
// kernel: tpu_custom_call.1
= control target key start
LH: loop header
LB: loop body
LE: loop exit
PB: predicated region body
PF: predicated region fallthrough
CT: control target
= control target key end

     0   :  { %19 = vsyncpa [#allocation3], 0  ;;  %s3327_s0 = inlined_call_operand.hbm [shape: f32[8,128], index: 0, kind: input, shape index: {}]   ;;  %s3328_s1 = inlined_call_operand.hbm [shape: f32[6,128], index: 1, kind: input, shape index: {}]   ;;  %s3329_s2 = inlined_call_operand.hbm [shape: bf16[128,128], index: 2, kind: input, shape index: {}]   ;;  %s3330_s3 = inlined_call_operand.hbm [shape: bf16[128,128], index: 3, kind: input, shape index: {}]   ;;  %s3331_s4 = inlined_call_operand.vmem [shape: f32[16,8], index: 4, kind: input, shape index: {}]   ;;  %s3332_s5 = inlined_call_operand.vmem [shape: f32[16,6], index: 5, kind: input, shape index: {}]   ;;  %s3333_s6 = inlined_call_operand.vmem [shape: f32[2,32,32], index: 6, kind: input, shape index: {}]   ;;  %s3334_s7 = inlined_call_operand.hbm [shape: f32[2,16,32], index: 7, kind: input, shape index: {}]   ;;  %s3335_s8 = inlined_call_operand.hbm [shape: f32[2,32,32], index: 8, kind: input, shape index: {}]   ;;  %s3336_s9 = inlined_call_operand.hbm [shape: f32[2,16,32], index: 9, kind: input, shape index: {}]   ;;  %s3337_s10 = inlined_call_operand.vmem [shape: f32[10,16], index: 10, kind: input, shape index: {}]   ;;  %s3338_s11 = inlined_call_operand.hbm [shape: f32[12,16], index: 11, kind: input, shape index: {}]   ;;  %s3339_s12 = inlined_call_operand.hbm [shape: f32[10,128], index: 12, kind: output, shape index: {0}]   ;;  %s3340_s13 = inlined_call_operand.hbm [shape: f32[12,128], index: 13, kind: output, shape index: {1}]  }
   0x1   :  { %20 = vsyncpa [#allocation6], 0 }
   0x2   :  { %21 = vsyncpa [#allocation9], 0 }
   0x3   :  { %22 = vsyncpa [#allocation12], 0 }
   0x4   :  { %23 = vsyncpa [#allocation15], 0 }
   0x5   :  { %24 = vsyncpa [#allocation4], 0 }
   0x6   :  { %25 = vsyncpa [#allocation18], 0  ;;  %s2802_s25 = smov [#allocation5]   ;;  %s2568_s29 = scalar_lea.hbm %s3328_s1, 128 }
   0x7   :  { %s42_s26 = sshll.u32 %s2802_s25, 4  ;;  %p2569_p0 = scmp.ne.s32.totalorder %s3328_s1, %s2568_s29  ;;  %s43_s26 = int_to_ptr.vmem [resolvable:$true] %s42_s26 }
   0x8   :  { %p2572_p1 = scmp.lt.u32.totalorder %s2568_s29, %s3328_s1 }
   0xa   :  { %p2574_p2 = pnand %p2572_p1, %p2569_p0 }
   0xc   :  { %2577 = shalt.err (!%p2574_p2)
}
   0xd   :  { %s2578_s17 = scalar_lea.vmem %s43_s26, 128  ;;  %p2583_p4 = scmp.lt.s32.totalorder %s43_s26, %s43_s26 }
   0xe   :  { %p2579_p3 = scmp.ne.s32.totalorder %s43_s26, %s2578_s17  ;;  %p2584_p5 = scmp.lt.s32.totalorder %s2578_s17, %s2578_s17 }
  0x10   :  { %p2585_p6 = por %p2584_p5, %p2583_p4 }
  0x12   :  { %p2586_p7 = pnand %p2585_p6, %p2579_p3 }
  0x14   :  { %2589 = shalt.err (!%p2586_p7)
}
  0x15   :  { %45 = dma.hbm_to_vmem [thread:$0]  %s3328_s1, 128, %s43_s26, [#allocation6]  }
  0x16   :  { %s2803_s20 = smov [#allocation8]   ;;  %s2590_s24 = scalar_lea.hbm %s3330_s3, 1024 }
  0x17   :  { %s63_s21 = sshll.u32 %s2803_s20, 4  ;;  %p2591_p8 = scmp.ne.s32.totalorder %s3330_s3, %s2590_s24  ;;  %s64_s21 = int_to_ptr.vmem [resolvable:$true] %s63_s21 }
  0x18   :  { %p2594_p9 = scmp.lt.u32.totalorder %s2590_s24, %s3330_s3 }
  0x1a   :  { %p2596_p10 = pnand %p2594_p9, %p2591_p8 }
  0x1c   :  { %2599 = shalt.err (!%p2596_p10)
}
  0x1d   :  { %s2600_s30 = scalar_lea.vmem %s64_s21, 1024  ;;  %p2605_p12 = scmp.lt.s32.totalorder %s64_s21, %s64_s21 }
  0x1e   :  { %p2601_p11 = scmp.ne.s32.totalorder %s64_s21, %s2600_s30  ;;  %p2606_p13 = scmp.lt.s32.totalorder %s2600_s30, %s2600_s30 }
  0x20   :  { %p2607_p0 = por %p2606_p13, %p2605_p12 }
  0x22   :  { %p2608_p1 = pnand %p2607_p0, %p2601_p11 }
  0x24   :  { %2611 = shalt.err (!%p2608_p1)
}
  0x25   :  { %s2804_s1 = smov 64   ;;  %s2805_s26 = smov 4  }
  0x26   :  { %69 = dma.hbm_to_vmem [thread:$0]  %s3330_s3, 1024, %s64_s21, [#allocation9], %s2804_s1, %s2804_s1, %s2805_s26  }
  0x27   :  { %s2806_s16 = smov [#allocation11]   ;;  %s2807_s18 = smov [#allocation2]  }
  0x28   :  { %s93_s17 = sshll.u32 %s2806_s16, 4  ;;  %s32_s19 = sshll.u32 %s2807_s18, 4  ;;  %s94_s17 = int_to_ptr.vmem [resolvable:$true] %s93_s17  ;;  %s33_s19 = int_to_ptr.vmem [resolvable:$true] %s32_s19 }
  0x29   :  { %s2612_s23 = scalar_lea.hbm %s3335_s8, 1024 }
  0x2a   :  { %p2613_p2 = scmp.ne.s32.totalorder %s3335_s8, %s2612_s23  ;;  %p2616_p3 = scmp.lt.u32.totalorder %s2612_s23, %s3335_s8 }
  0x2c   :  { %p2618_p4 = pnand %p2616_p3, %p2613_p2 }
  0x2e   :  { %2621 = shalt.err (!%p2618_p4)
}
  0x2f   :  { %s2622_s3 = scalar_lea.vmem %s94_s17, 1024  ;;  %p2627_p6 = scmp.lt.s32.totalorder %s94_s17, %s94_s17 }
  0x30   :  { %p2623_p5 = scmp.ne.s32.totalorder %s94_s17, %s2622_s3  ;;  %p2628_p7 = scmp.lt.s32.totalorder %s2622_s3, %s2622_s3 }
  0x32   :  { %p2629_p8 = por %p2628_p7, %p2627_p6 }
  0x34   :  { %p2630_p9 = pnand %p2629_p8, %p2623_p5 }
  0x36   :  { %2633 = shalt.err (!%p2630_p9)
}
  0x37   :  { %s2808_s21 = smov 128   ;;  %s2809_s29 = smov 8  }
  0x38   :  { %99 = dma.hbm_to_vmem [thread:$0]  %s3335_s8, 1024, %s94_s17, [#allocation12], %s2808_s21, %s2808_s21, %s2809_s29  }
  0x39   :  { %s2634_s18 = scalar_lea.hbm %s3327_s0, 128 }
  0x3a   :  { %p2635_p10 = scmp.ne.s32.totalorder %s3327_s0, %s2634_s18  ;;  %p2638_p11 = scmp.lt.u32.totalorder %s2634_s18, %s3327_s0 }
  0x3c   :  { %p2640_p12 = pnand %p2638_p11, %p2635_p10 }
  0x3e   :  { %2643 = shalt.err (!%p2640_p12)
}
  0x3f   :  { %s2644_s25 = scalar_lea.vmem %s33_s19, 128  ;;  %p2649_p0 = scmp.lt.s32.totalorder %s33_s19, %s33_s19 }
  0x40   :  { %p2645_p13 = scmp.ne.s32.totalorder %s33_s19, %s2644_s25  ;;  %p2650_p1 = scmp.lt.s32.totalorder %s2644_s25, %s2644_s25 }
  0x42   :  { %p2651_p2 = por %p2650_p1, %p2649_p0 }
  0x44   :  { %p2652_p3 = pnand %p2651_p2, %p2645_p13 }
  0x46   :  { %2655 = shalt.err (!%p2652_p3)
}
  0x47   :  { %35 = dma.hbm_to_vmem [thread:$0]  %s3327_s0, 128, %s33_s19, [#allocation3]  }
  0x48   :  { %s2810_s27 = smov [#allocation7]   ;;  %s2811_s3 = smov [#allocation10]  }
  0x49   :  { %s51_s28 = sshll.u32 %s2810_s27, 4  ;;  %s81_s30 = sshll.u32 %s2811_s3, 4  ;;  %s52_s28 = int_to_ptr.vmem [resolvable:$true] %s51_s28  ;;  %s2943_s30 = int_to_ptr.vmem [resolvable:$true] %s81_s30 }
  0x4a   :  { %s2656_s16 = scalar_lea.hbm %s3329_s2, 1024 }
  0x4b   :  { %p2657_p4 = scmp.ne.s32.totalorder %s3329_s2, %s2656_s16  ;;  %p2660_p5 = scmp.lt.u32.totalorder %s2656_s16, %s3329_s2 }
  0x4d   :  { %p2662_p6 = pnand %p2660_p5, %p2657_p4 }
  0x4f   :  { %2665 = shalt.err (!%p2662_p6)
}
  0x50   :  { %s2666_s0 = scalar_lea.vmem %s52_s28, 1024  ;;  %p2671_p8 = scmp.lt.s32.totalorder %s52_s28, %s52_s28 }
  0x51   :  { %p2667_p7 = scmp.ne.s32.totalorder %s52_s28, %s2666_s0  ;;  %p2672_p9 = scmp.lt.s32.totalorder %s2666_s0, %s2666_s0 }
  0x53   :  { %p2673_p10 = por %p2672_p9, %p2671_p8 }
  0x55   :  { %p2674_p11 = pnand %p2673_p10, %p2667_p7 }
  0x57   :  { %2677 = shalt.err (!%p2674_p11)
}
  0x58   :  { %57 = dma.hbm_to_vmem [thread:$0]  %s3329_s2, 1024, %s52_s28, [#allocation6], %s2804_s1, %s2804_s1, %s2805_s26  }
  0x59   :  { %s2678_s17 = scalar_lea.hbm %s3334_s7, 512 }
  0x5a   :  { %p2679_p12 = scmp.ne.s32.totalorder %s3334_s7, %s2678_s17  ;;  %p2682_p13 = scmp.lt.u32.totalorder %s2678_s17, %s3334_s7 }
  0x5c   :  { %p2684_p0 = pnand %p2682_p13, %p2679_p12 }
  0x5e   :  { %2687 = shalt.err (!%p2684_p0)
}
  0x5f   :  { %s2688_s16 = scalar_lea.vmem %s2943_s30, 512  ;;  %p2693_p2 = scmp.lt.s32.totalorder %s2943_s30, %s2943_s30 }
  0x60   :  { %p2689_p1 = scmp.ne.s32.totalorder %s2943_s30, %s2688_s16  ;;  %p2694_p3 = scmp.lt.s32.totalorder %s2688_s16, %s2688_s16 }
  0x62   :  { %p2695_p4 = por %p2694_p3, %p2693_p2 }
  0x64   :  { %p2696_p5 = pnand %p2695_p4, %p2689_p1 }
  0x66   :  { %2699 = shalt.err (!%p2696_p5)
}
  0x67   :  { %87 = dma.hbm_to_vmem [thread:$0]  %s3334_s7, 512, %s2943_s30, [#allocation9], %s2808_s21, %s2808_s21, %s2809_s29  }
  0x68   :  { %s2812_s26 = smov [#allocation13]   ;;  %s2813_s18 = smov [#allocation14]  }
  0x69   :  { %s105_s28 = sshll.u32 %s2812_s26, 4  ;;  %s119_s20 = sshll.u32 %s2813_s18, 4  ;;  %s106_s28 = int_to_ptr.vmem [resolvable:$true] %s105_s28  ;;  %s2980_s20 = int_to_ptr.vmem [resolvable:$true] %s119_s20 }
  0x6a   :  { %s2700_s0 = scalar_lea.hbm %s3336_s9, 512 }
  0x6b   :  { %p2701_p6 = scmp.ne.s32.totalorder %s3336_s9, %s2700_s0  ;;  %p2704_p7 = scmp.lt.u32.totalorder %s2700_s0, %s3336_s9 }
  0x6d   :  { %p2706_p8 = pnand %p2704_p7, %p2701_p6 }
  0x6f   :  { %2709 = shalt.err (!%p2706_p8)
}
  0x70   :  { %s2710_s7 = scalar_lea.vmem %s106_s28, 512  ;;  %p2715_p10 = scmp.lt.s32.totalorder %s106_s28, %s106_s28 }
  0x71   :  { %p2711_p9 = scmp.ne.s32.totalorder %s106_s28, %s2710_s7  ;;  %p2716_p11 = scmp.lt.s32.totalorder %s2710_s7, %s2710_s7 }
  0x73   :  { %p2717_p12 = por %p2716_p11, %p2715_p10 }
  0x75   :  { %p2718_p13 = pnand %p2717_p12, %p2711_p9 }
  0x77   :  { %2721 = shalt.err (!%p2718_p13)
}
  0x78   :  { %111 = dma.hbm_to_vmem [thread:$0]  %s3336_s9, 512, %s106_s28, [#allocation12], %s2808_s21, %s2808_s21, %s2809_s29  }
  0x79   :  { %s2722_s14 = scalar_lea.hbm %s3338_s11, 256 }
  0x7a   :  { %p2723_p0 = scmp.ne.s32.totalorder %s3338_s11, %s2722_s14  ;;  %p2726_p1 = scmp.lt.u32.totalorder %s2722_s14, %s3338_s11 }
  0x7c   :  { %p2728_p2 = pnand %p2726_p1, %p2723_p0 }
  0x7e   :  { %2731 = shalt.err (!%p2728_p2)
}
  0x7f   :  { %s2732_s26 = scalar_lea.vmem %s2980_s20, 256  ;;  %p2737_p4 = scmp.lt.s32.totalorder %s2980_s20, %s2980_s20 }
  0x80   :  { %p2733_p3 = scmp.ne.s32.totalorder %s2980_s20, %s2732_s26  ;;  %p2738_p5 = scmp.lt.s32.totalorder %s2732_s26, %s2732_s26 }
  0x82   :  { %p2739_p6 = por %p2738_p5, %p2737_p4 }
  0x84   :  { %p2740_p7 = pnand %p2739_p6, %p2733_p3 }
  0x86   :  { %2743 = shalt.err (!%p2740_p7)
}
  0x87   :  { %125 = dma.hbm_to_vmem [thread:$0]  %s3338_s11, 256, %s2980_s20, [#allocation15], %s2808_s21, %s2808_s21, %s2809_s29  }
  0x88   :  { %2788 = dma.done.wait [#allocation3], 128  }
  0x89   :  { %2789 = vsyncadd [#allocation3], 4294967168 }
  0x8a   :  { %2790 = dma.done.wait [#allocation6], 1152  }
  0x8b   :  { %2791 = vsyncadd [#allocation6], 4294966144 }
  0x8c   :  { %2792 = dma.done.wait [#allocation9], 1536  }
  0x8d   :  { %2793 = vsyncadd [#allocation9], 4294965760 }
  0x8e   :  { %2794 = dma.done.wait [#allocation12], 1536  }
  0x8f   :  { %2795 = vsyncadd [#allocation12], 4294965760 }
  0x90   :  { %2796 = dma.done.wait [#allocation15], 256  }
  0x91   :  { %2797 = vsyncadd [#allocation15], 4294967040  ;;  %v2814_v0 = vmov 0.0   ;;  %vm186_vm0 = vcmask 64512   ;;  %v185_v1 = vld [vmem:[#allocation2] sm:$0xff]  ;;  %v184_v3 = vld [vmem:[%s3331_s4 + $0x8] sm:$0xff] }
  0x92   :  { %2152 = vmatprep.subr.bf16.mxu1 %v2814_v0  ;;  %v183_v2 = vld [vmem:[%s3331_s4] sm:$0xff]  ;;  %2147 = vmatprep.subr.mxu0 %v185_v1  ;;  %v3024_v4 = vld [vmem:[#allocation7] sm:$0xff]   ;;  %v3031_v6 = vld [vmem:[#allocation7 + $0x8] sm:$0xff]   ;;  %vm2815_vm1 = vmmov 0   ;;  %vm454_vm2 = vcmask 261120   ;;  %s2816_s16 = smov 0.0  }
  0x93   :  { %2149 = vmatprep.mubr.msk.f32.mxu0 %vm186_vm0, %v183_v2  ;;  %2148 = vmatpush3.msra.mxu0 %v185_v1  ;;  %v3028_v5 = vld [vmem:[#allocation8] sm:$0xff]   ;;  %v3036_v7 = vld [vmem:[#allocation8 + $0x8] sm:$0xff]   ;;  %v3039_v8 = vld [vmem:[#allocation7 + $0x10] sm:$0xff]   ;;  %vm695_vm3 = vcmask 1045504   ;;  %vm688_vm4 = vcmask 48128   ;;  %vm1746_vm5 = vcmask 130048  }
  0x94   :  { %2150 = vmatmul.mubr.msk.f32.vlgmr.msra.gmra.mrb[0].mxu0 %vm186_vm0, %v184_v3  ;;  %2172 = vmatprep.subr.bf16.mxu0 %v2814_v0  ;;  %v3044_v9 = vld [vmem:[#allocation8 + $0x10] sm:$0xff]   ;;  %v3047_v10 = vld [vmem:[#allocation7 + $0x18] sm:$0xff]   ;;  %v3055_v12 = vld [vmem:[#allocation7 + $0x20] sm:$0xff]  }
  0x95   :  { %2153 = vmatpush3.bf16.xpose.msra.mxu1 %v3024_v4  ;;  %v3052_v11 = vld [vmem:[#allocation8 + $0x18] sm:$0xff]   ;;  %v3060_v13 = vld [vmem:[#allocation8 + $0x20] sm:$0xff]   ;;  %v3063_v14 = vld [vmem:[#allocation7 + $0x28] sm:$0xff]   ;;  %2168 = vmatprep.mubr.msk.bf16.mxu1 %vm2815_vm1, %v2814_v0 }
  0x96   :  { %2154 = vmatprep.subr.bf16.mxu1 %v2814_v0  ;;  %v3068_v15 = vld [vmem:[#allocation8 + $0x28] sm:$0xff]   ;;  %v3071_v16 = vld [vmem:[#allocation7 + $0x30] sm:$0xff]   ;;  %v3079_v18 = vld [vmem:[#allocation7 + $0x38] sm:$0xff]   ;;  %2188 = vmatprep.mubr.msk.bf16.mxu0 %vm2815_vm1, %v2814_v0 }
  0x97   :  { %v3076_v17 = vld [vmem:[#allocation8 + $0x30] sm:$0xff]   ;;  %v3084_v19 = vld [vmem:[#allocation8 + $0x38] sm:$0xff]   ;;  %v452_v35 = vld [vmem:[%s3333_s6 + $0x10] sm:$0xff] }
  0x98   :  { %v450_v23 = vld [vmem:[%s3333_s6] sm:$0xff]  ;;  %v451_v34 = vld [vmem:[%s3333_s6 + $0x8] sm:$0xff]  ;;  %v453_v36 = vld [vmem:[%s3333_s6 + $0x18] sm:$0xff] }
  0x99   :  { %v603_v2 = vld [vmem:[#allocation10] sm:$0xff] }
  0x9a   :  { %2173 = vmatpush3.bf16.xpose.msra.mxu0 %v3028_v5 }
  0x9b   :  { %2174 = vmatprep.subr.bf16.mxu0 %v2814_v0 }
  0x9d   :  { %2155 = vmatpush3.bf16.xpose.msra.mxu1 %v3031_v6 }
  0x9e   :  { %2156 = vmatprep.subr.bf16.mxu1 %v2814_v0 }
  0xa2   :  { %2175 = vmatpush3.bf16.xpose.msra.mxu0 %v3036_v7 }
  0xa3   :  { %2176 = vmatprep.subr.bf16.mxu0 %v2814_v0 }
  0xa5   :  { %2157 = vmatpush3.bf16.xpose.msra.mxu1 %v3039_v8 }
  0xa6   :  { %2158 = vmatprep.subr.bf16.mxu1 %v2814_v0 }
  0xaa   :  { %2177 = vmatpush3.bf16.xpose.msra.mxu0 %v3044_v9 }
  0xab   :  { %2178 = vmatprep.subr.bf16.mxu0 %v2814_v0 }
  0xad   :  { %2159 = vmatpush3.bf16.xpose.msra.mxu1 %v3047_v10 }
  0xae   :  { %2160 = vmatprep.subr.bf16.mxu1 %v2814_v0 }
  0xb2   :  { %2179 = vmatpush3.bf16.xpose.msra.mxu0 %v3052_v11 }
  0xb3   :  { %2180 = vmatprep.subr.bf16.mxu0 %v2814_v0 }
  0xb5   :  { %2161 = vmatpush3.bf16.xpose.msra.mxu1 %v3055_v12 }
  0xb6   :  { %2162 = vmatprep.subr.bf16.mxu1 %v2814_v0 }
  0xba   :  { %2181 = vmatpush3.bf16.xpose.msra.mxu0 %v3060_v13 }
  0xbb   :  { %2182 = vmatprep.subr.bf16.mxu0 %v2814_v0 }
  0xbd   :  { %2163 = vmatpush3.bf16.xpose.msra.mxu1 %v3063_v14 }
  0xbe   :  { %2164 = vmatprep.subr.bf16.mxu1 %v2814_v0 }
  0xc2   :  { %2183 = vmatpush3.bf16.xpose.msra.mxu0 %v3068_v15 }
  0xc3   :  { %2184 = vmatprep.subr.bf16.mxu0 %v2814_v0 }
  0xc5   :  { %2165 = vmatpush3.bf16.xpose.msra.mxu1 %v3071_v16 }
  0xc6   :  { %2166 = vmatprep.subr.bf16.mxu1 %v2814_v0 }
  0xca   :  { %2185 = vmatpush3.bf16.xpose.msra.mxu0 %v3076_v17 }
  0xcb   :  { %2186 = vmatprep.subr.bf16.mxu0 %v2814_v0 }
  0xcd   :  { %2167 = vmatpush3.bf16.xpose.msra.mxu1 %v3079_v18 }
  0xd2   :  { %2187 = vmatpush3.bf16.xpose.msra.mxu0 %v3084_v19 }
 0x167   :  { %v3091_v20 = vpop.f32.mrb[0].mxu0 }
 0x168   :  { %v3093_v21 = vpop.f32.mrb[1].mxu0 }
 0x169   :  { %v271_v22 = vpack.c.bf16 %v3091_v20, %v3093_v21 }
 0x16b   :  { %2169 = vmatmul.mubr.bf16.vlgmr.msra.gmra.mrb[0].mxu1 %v271_v22  ;;  %2189 = vmatmul.mubr.bf16.vlgmr.msra.gmra.mrb[4].mxu0 %v271_v22 }
 0x16c   :  { %2200 = vmatprep.mubr.msk.f32.mxu1 %vm454_vm2, %v450_v23  ;;  %2214 = vmatprep.mubr.msk.f32.mxu0 %vm454_vm2, %v603_v2  ;;  %v860_v2 = vld [vmem:[#allocation11 + $0x18] sm:$0xff] }
 0x23e   :  { %v354_v24 = vpop.f32.mrb[0].mxu1  ;;  %v443_v25 = vpop.f32.mrb[4].mxu0 }
 0x23f   :  { %v2170_v26 = vpop.f32.mrb[1].mxu1  ;;  %v2190_v27 = vpop.f32.mrb[5].mxu0 }
 0x240   :  { %v357_v28 = vpop.f32.mrb[2].mxu1  ;;  %v446_v29 = vpop.f32.mrb[6].mxu0 }
 0x241   :  { %v2431_v30 = vpack.c.bf16 %v357_v28, %v354_v24  ;;  %v2435_v31 = vpack.c.bf16 %v446_v29, %v443_v25  ;;  %v2171_v32 = vpop.f32.mrb[3].mxu1  ;;  %v2191_v33 = vpop.f32.mrb[7].mxu0 }
 0x243   :  { %2432 = vmatprep.subr.bf16.mxu1 %v2431_v30 }
 0x244   :  { %2434 = vmatpush3.bf16.msra.mxu1 %v2431_v30 }
 0x245   :  { %2436 = vmatprep.subr.bf16.mxu1 %v2435_v31 }
 0x248   :  { %2438 = vmatpush3.bf16.msra.mxu1 %v2435_v31 }
 0x249   :  { %2222 = vmatprep.subr.bf16.mxu1 %v2814_v0 }
 0x24b   :  { %2201 = vmatmul.mubr.msk.f32.vlgmr.msra.gmra.mrb[4].mxu1 %vm454_vm2, %v451_v34 }
 0x24c   :  { %2203 = vmatprep.mubr.msk.f32.mxu1 %vm454_vm2, %v452_v35  ;;  %2223 = vmatpush3.bf16.msra.mxu1 %v3024_v4 }
 0x24d   :  { %2224 = vmatprep.subr.bf16.mxu1 %v2814_v0 }
 0x24f   :  { %2204 = vmatmul.mubr.msk.f32.gmra.mrb[6].mxu1 %vm454_vm2, %v453_v36 }
 0x250   :  { %2225 = vmatpush3.bf16.msra.mxu1 %v3031_v6  ;;  %2238 = vmatprep.mubr.msk.bf16.mxu1 %vm2815_vm1, %v2814_v0 }
 0x251   :  { %2226 = vmatprep.subr.bf16.mxu1 %v2814_v0 }
 0x254   :  { %2227 = vmatpush3.bf16.msra.mxu1 %v3039_v8 }
 0x255   :  { %2228 = vmatprep.subr.bf16.mxu1 %v2814_v0 }
 0x258   :  { %2229 = vmatpush3.bf16.msra.mxu1 %v3047_v10 }
 0x259   :  { %2230 = vmatprep.subr.bf16.mxu1 %v2814_v0 }
 0x25c   :  { %2231 = vmatpush3.bf16.msra.mxu1 %v3055_v12 }
 0x25d   :  { %2232 = vmatprep.subr.bf16.mxu1 %v2814_v0 }
 0x260   :  { %2233 = vmatpush3.bf16.msra.mxu1 %v3063_v14 }
 0x261   :  { %2234 = vmatprep.subr.bf16.mxu1 %v2814_v0 }
 0x264   :  { %2235 = vmatpush3.bf16.msra.mxu1 %v3071_v16 }
 0x265   :  { %2236 = vmatprep.subr.bf16.mxu1 %v2814_v0 }
 0x268   :  { %2237 = vmatpush3.bf16.msra.mxu1 %v3079_v18 }
 0x31e   :  { %v2202_v37 = vpop.f32.mrb[4].mxu1 }
 0x31f   :  { %v565_v38 = vmul.f32 %v2202_v37, %v2202_v37  ;;  %v533_v39 = vpop.f32.mrb[5].mxu1 }
 0x320   :  { %v552_v40 = vadd.f32 %v2202_v37, %v533_v39  ;;  %v564_v41 = vmul.f32 %v533_v39, %v533_v39 }
 0x322   :  { %v2205_v42 = vpop.f32.mrb[6].mxu1  ;;  %v568_v43 = vadd.f32 %v565_v38, %v564_v41  ;;  %v268_v41 = vld [vmem:[%s3332_s5] sm:$0xff] }
 0x323   :  { %v543_v44 = vpop.f32.mrb[7].mxu1  ;;  %v567_v48 = vmul.f32 %v2205_v42, %v2205_v42 }
 0x324   :  { %v566_v45 = vmul.f32 %v543_v44, %v543_v44  ;;  %v553_v46 = vadd.f32 %v552_v40, %v543_v44  ;;  %v604_v40 = vld [vmem:[#allocation10 + $0x8] sm:$0xff] }
 0x326   :  { %v554_v47 = vadd.f32 %v2205_v42, %v553_v46  ;;  %v569_v49 = vadd.f32 %v568_v43, %v566_v45 }
 0x328   :  { %555 = vadd.xlane.f32.xlu0 %v554_v47  ;;  %v570_v50 = vadd.f32 %v569_v49, %v567_v48 }
 0x32c   :  { %571 = vadd.xlane.f32.xlu0 %v570_v50 }
 0x3b5   :  { %v556_v51 = vpop.xlane.xlu0 %555 }
 0x3b6   :  { %v557_v52 = vrot.slane %v556_v51, 4 }
 0x3b8   :  { %v558_v53 = vadd.f32 %v557_v52, %v556_v51  ;;  %v857_v52 = vld [vmem:[#allocation11] sm:$0xff] }
 0x3b9   :  { %v572_v54 = vpop.xlane.xlu0 %571 }
 0x3ba   :  { %v559_v55 = vrot.slane %v558_v53, 2  ;;  %v573_v56 = vrot.slane %v572_v54, 4 }
 0x3bc   :  { %v574_v57 = vadd.f32 %v573_v56, %v572_v54  ;;  %v560_v58 = vadd.f32 %v559_v55, %v558_v53 }
 0x3be   :  { %v575_v59 = vrot.slane %v574_v57, 2  ;;  %v561_v60 = vrot.slane %v560_v58, 1 }
 0x3c0   :  { %v562_v61 = vadd.f32 %v561_v60, %v560_v58  ;;  %v576_v62 = vadd.f32 %v575_v59, %v574_v57 }
 0x3c2   :  { %2503 = vpush %v562_v61  ;;  %v577_v63 = vrot.slane %v576_v62, 1 }
 0x3c4   :  { %v578_v1 = vadd.f32 %v577_v63, %v576_v62  ;;  %v858_v63 = vld [vmem:[#allocation11 + $0x8] sm:$0xff] }
 0x3c6   :  { %2505 = vpush %v578_v1  ;;  %v859_v1 = vld [vmem:[#allocation11 + $0x10] sm:$0xff] }
 0x3f3   :  { %s2504_s30 = spop %2503 }
 0x3f4   :  { %s580_s17 = smul.f32 0.0013020834, %s2504_s30 }
 0x3f6   :  { %v585_v3 = vstv %s580_s17  ;;  %s582_s27 = smul.f32 %s580_s17, %s580_s17 }
 0x3f7   :  { %s2506_s3 = spop %2505  ;;  %v586_v22 = vsub.f32 %v533_v39, %v585_v3  ;;  %v587_v23 = vsub.f32 %v2202_v37, %v585_v3  ;;  %v588_v24 = vsub.f32 %v543_v44, %v585_v3  ;;  %v589_v25 = vsub.f32 %v2205_v42, %v585_v3  ;;  %v270_v39 = vld [vmem:[#allocation5] sm:$0x3f] }
 0x3f8   :  { %s581_s14 = smul.f32 0.0013020834, %s2506_s3  ;;  %v269_v42 = vld [vmem:[%s3332_s5 + $0x8] sm:$0xff] }
 0x3fa   :  { %s583_s15 = ssub.f32 %s581_s14, %s582_s27  ;;  %s2817_s27 = smov [#allocation17]  }
 0x3fb   :  { %s1932_s3 = sshll.u32 %s2817_s27, 4  ;;  %s1933_s3 = int_to_ptr.vmem [resolvable:$true] %s1932_s3 }
 0x3fc   :  { %s584_s2 = smax.f32 %s2816_s16, %s583_s15  ;;  %s2744_s14 = scalar_lea.vmem %s1933_s3, 256 }
 0x3fd   :  { %s590_s1 = sadd.f32 1e-05, %s584_s2  ;;  %p2745_p8 = scmp.ne.s32.totalorder %s1933_s3, %s2744_s14 }
 0x3fe   :  { %p2749_p9 = scmp.lt.s32.totalorder %s1933_s3, %s1933_s3  ;;  %p2750_p10 = scmp.lt.s32.totalorder %s2744_s14, %s2744_s14 }
 0x3ff   :  { %v591_v26 = vstv %s590_s1 }
 0x400   :  { %2560 = vrsqrt.f32 %v591_v26  ;;  %p2751_p11 = por %p2750_p10, %p2749_p9 }
 0x402   :  { %p2752_p12 = pnand %p2751_p11, %p2745_p8 }
 0x40a   :  { %v2561_v27 = vpop.eup %2560 }
 0x40b   :  { %2507 = vpush %v2561_v27 }
 0x43c   :  { %s2508_s26 = spop %2507 }
 0x43d   :  { %v594_v28 = vstv %s2508_s26 }
 0x43e   :  { %v595_v29 = vmul.f32 %v594_v28, %v586_v22  ;;  %v596_v30 = vmul.f32 %v594_v28, %v587_v23  ;;  %v597_v31 = vmul.f32 %v594_v28, %v588_v24  ;;  %v598_v32 = vmul.f32 %v594_v28, %v589_v25 }
 0x440   :  { %v599_v33 = vmax.f32 %v595_v29, 0.0  ;;  %v600_v34 = vmax.f32 %v596_v30, 0.0  ;;  %v601_v35 = vmax.f32 %v597_v31, 0.0  ;;  %v602_v36 = vmax.f32 %v598_v32, 0.0 }
 0x442   :  { %v2439_v37 = vpack.c.bf16 %v600_v34, %v599_v33  ;;  %v2443_v38 = vpack.c.bf16 %v602_v36, %v601_v35 }
 0x444   :  { %2440 = vmatprep.subr.bf16.mxu0 %v2439_v37 }
 0x445   :  { %2442 = vmatpush3.bf16.msra.mxu0 %v2439_v37 }
 0x446   :  { %2444 = vmatprep.subr.bf16.mxu0 %v2443_v38 }
 0x449   :  { %2446 = vmatpush3.bf16.msra.mxu0 %v2443_v38 }
 0x44a   :  { %2217 = vmatprep.subr.msk.mxu0 %vm695_vm3, %v270_v39 }
 0x44c   :  { %2215 = vmatmul.mubr.msk.f32.vlgmr.msra.gmra.mrb[2].mxu0 %vm454_vm2, %v604_v40 }
 0x44d   :  { %2218 = vmatpush3.msk.msra.mxu0 %vm695_vm3, %v270_v39  ;;  %2219 = vmatprep.mubr.msk.f32.mxu0 %vm688_vm4, %v268_v41 }
 0x44e   :  { %2242 = vmatprep.subr.bf16.mxu0 %v2814_v0 }
 0x450   :  { %2220 = vmatmul.mubr.msk.f32.vlgmr.msra.gmra.mrb[8].mxu0 %vm688_vm4, %v269_v42 }
 0x451   :  { %2243 = vmatpush3.bf16.msra.mxu0 %v3028_v5  ;;  %2258 = vmatprep.mubr.msk.bf16.mxu0 %vm2815_vm1, %v2814_v0 }
 0x452   :  { %2244 = vmatprep.subr.bf16.mxu0 %v2814_v0 }
 0x455   :  { %2245 = vmatpush3.bf16.msra.mxu0 %v3036_v7 }
 0x456   :  { %2246 = vmatprep.subr.bf16.mxu0 %v2814_v0 }
 0x459   :  { %2247 = vmatpush3.bf16.msra.mxu0 %v3044_v9 }
 0x45a   :  { %2248 = vmatprep.subr.bf16.mxu0 %v2814_v0 }
 0x45d   :  { %2249 = vmatpush3.bf16.msra.mxu0 %v3052_v11 }
 0x45e   :  { %2250 = vmatprep.subr.bf16.mxu0 %v2814_v0 }
 0x461   :  { %2251 = vmatpush3.bf16.msra.mxu0 %v3060_v13 }
 0x462   :  { %2252 = vmatprep.subr.bf16.mxu0 %v2814_v0 }
 0x465   :  { %2253 = vmatpush3.bf16.msra.mxu0 %v3068_v15 }
 0x466   :  { %2254 = vmatprep.subr.bf16.mxu0 %v2814_v0 }
 0x469   :  { %2255 = vmatpush3.bf16.msra.mxu0 %v3076_v17 }
 0x46a   :  { %2256 = vmatprep.subr.bf16.mxu0 %v2814_v0 }
 0x46d   :  { %2257 = vmatpush3.bf16.msra.mxu0 %v3084_v19 }
 0x51f   :  { %v2216_v43 = vpop.f32.mrb[2].mxu0 }
 0x520   :  { %v677_v44 = vpop.f32.mrb[3].mxu0  ;;  %v687_v45 = vmul.f32 0.1, %v2216_v43 }
 0x521   :  { %v686_v46 = vmul.f32 0.1, %v677_v44 }
 0x523   :  { %v2221_v47 = vpop.f32.mrb[8].mxu0 }
 0x524   :  { %v3158_v48 = vadd.f32 %v2221_v47, %v687_v45  ;;  %v765_v49 = vpop.f32.mrb[9].mxu0 }
 0x525   :  { %v3160_v50 = vadd.f32 %v765_v49, %v686_v46 }
 0x527   :  { %v774_v51 = vpack.c.bf16 %v3158_v48, %v3160_v50 }
 0x529   :  { %2239 = vmatmul.mubr.bf16.vlgmr.msra.gmra.mrb[8].mxu1 %v774_v51  ;;  %2259 = vmatmul.mubr.bf16.vlgmr.msra.gmra.mrb[12].mxu0 %v774_v51  ;;  %v1009_v51 = vld [vmem:[#allocation13] sm:$0xff] }
 0x52a   :  { %2270 = vmatprep.mubr.msk.f32.mxu1 %vm454_vm2, %v857_v52  ;;  %2284 = vmatprep.mubr.msk.f32.mxu0 %vm454_vm2, %v1009_v51 }
 0x5fc   :  { %v809_v53 = vpop.f32.mrb[8].mxu1  ;;  %v850_v54 = vpop.f32.mrb[12].mxu0 }
 0x5fd   :  { %v2240_v55 = vpop.f32.mrb[9].mxu1  ;;  %v2260_v56 = vpop.f32.mrb[13].mxu0 }
 0x5fe   :  { %v812_v57 = vpop.f32.mrb[10].mxu1  ;;  %v853_v58 = vpop.f32.mrb[14].mxu0 }
 0x5ff   :  { %v2447_v59 = vpack.c.bf16 %v812_v57, %v809_v53  ;;  %v2451_v60 = vpack.c.bf16 %v853_v58, %v850_v54  ;;  %v2241_v61 = vpop.f32.mrb[11].mxu1  ;;  %v2261_v62 = vpop.f32.mrb[15].mxu0 }
 0x601   :  { %2448 = vmatprep.subr.bf16.mxu1 %v2447_v59 }
 0x602   :  { %2450 = vmatpush3.bf16.msra.mxu1 %v2447_v59 }
 0x603   :  { %2452 = vmatprep.subr.bf16.mxu1 %v2451_v60 }
 0x606   :  { %2454 = vmatpush3.bf16.msra.mxu1 %v2451_v60 }
 0x607   :  { %2287 = vmatprep.subr.bf16.mxu1 %v2814_v0 }
 0x609   :  { %2271 = vmatmul.mubr.msk.f32.vlgmr.msra.gmra.mrb[12].mxu1 %vm454_vm2, %v858_v63 }
 0x60a   :  { %2273 = vmatprep.mubr.msk.f32.mxu1 %vm454_vm2, %v859_v1 }
 0x60d   :  { %2274 = vmatmul.mubr.msk.f32.gmra.mrb[14].mxu1 %vm454_vm2, %v860_v2 }
 0x60e   :  { %2303 = vmatprep.mubr.msk.bf16.mxu1 %vm2815_vm1, %v2814_v0 }
 0x60f   :  { %2288 = vmatpush3.bf16.xpose.msra.mxu1 %v3024_v4 }
 0x610   :  { %2289 = vmatprep.subr.bf16.mxu1 %v2814_v0 }
 0x617   :  { %2290 = vmatpush3.bf16.xpose.msra.mxu1 %v3031_v6 }
 0x618   :  { %2291 = vmatprep.subr.bf16.mxu1 %v2814_v0 }
 0x61f   :  { %2292 = vmatpush3.bf16.xpose.msra.mxu1 %v3039_v8 }
 0x620   :  { %2293 = vmatprep.subr.bf16.mxu1 %v2814_v0 }
 0x627   :  { %2294 = vmatpush3.bf16.xpose.msra.mxu1 %v3047_v10 }
 0x628   :  { %2295 = vmatprep.subr.bf16.mxu1 %v2814_v0 }
 0x62f   :  { %2296 = vmatpush3.bf16.xpose.msra.mxu1 %v3055_v12 }
 0x630   :  { %2297 = vmatprep.subr.bf16.mxu1 %v2814_v0 }
 0x637   :  { %2298 = vmatpush3.bf16.xpose.msra.mxu1 %v3063_v14 }
 0x638   :  { %2299 = vmatprep.subr.bf16.mxu1 %v2814_v0 }
 0x63f   :  { %2300 = vmatpush3.bf16.xpose.msra.mxu1 %v3071_v16 }
 0x640   :  { %2301 = vmatprep.subr.bf16.mxu1 %v2814_v0 }
 0x647   :  { %2302 = vmatpush3.bf16.xpose.msra.mxu1 %v3079_v18 }
 0x6dc   :  { %v2272_v3 = vpop.f32.mrb[12].mxu1 }
 0x6dd   :  { %v971_v22 = vmul.f32 %v2272_v3, %v2272_v3  ;;  %v939_v23 = vpop.f32.mrb[13].mxu1 }
 0x6de   :  { %v958_v24 = vadd.f32 %v2272_v3, %v939_v23  ;;  %v970_v25 = vmul.f32 %v939_v23, %v939_v23 }
 0x6e0   :  { %v2275_v26 = vpop.f32.mrb[14].mxu1  ;;  %v974_v27 = vadd.f32 %v971_v22, %v970_v25  ;;  %v1010_v25 = vld [vmem:[#allocation13 + $0x8] sm:$0xff] }
 0x6e1   :  { %v949_v28 = vpop.f32.mrb[15].mxu1  ;;  %v973_v32 = vmul.f32 %v2275_v26, %v2275_v26 }
 0x6e2   :  { %v972_v29 = vmul.f32 %v949_v28, %v949_v28  ;;  %v959_v30 = vadd.f32 %v958_v24, %v949_v28 }
 0x6e4   :  { %v960_v31 = vadd.f32 %v2275_v26, %v959_v30  ;;  %v975_v33 = vadd.f32 %v974_v27, %v972_v29 }
 0x6e6   :  { %961 = vadd.xlane.f32.xlu1 %v960_v31  ;;  %v976_v34 = vadd.f32 %v975_v33, %v973_v32  ;;  %v1985_v33 = vld [vmem:[%s3333_s6 + $0x20] sm:$0xff] }
 0x6ea   :  { %977 = vadd.xlane.f32.xlu1 %v976_v34 }
 0x773   :  { %v962_v35 = vpop.xlane.xlu1 %961 }
 0x774   :  { %v963_v36 = vrot.slane %v962_v35, 4 }
 0x776   :  { %v964_v37 = vadd.f32 %v963_v36, %v962_v35 }
 0x777   :  { %v978_v38 = vpop.xlane.xlu1 %977 }
 0x778   :  { %v965_v39 = vrot.slane %v964_v37, 2  ;;  %v979_v40 = vrot.slane %v978_v38, 4 }
 0x77a   :  { %v980_v41 = vadd.f32 %v979_v40, %v978_v38  ;;  %v966_v42 = vadd.f32 %v965_v39, %v964_v37 }
 0x77c   :  { %v981_v43 = vrot.slane %v980_v41, 2  ;;  %v967_v44 = vrot.slane %v966_v42, 1 }
 0x77e   :  { %v968_v45 = vadd.f32 %v967_v44, %v966_v42  ;;  %v982_v46 = vadd.f32 %v981_v43, %v980_v41  ;;  %v1986_v42 = vld [vmem:[%s3333_s6 + $0x28] sm:$0xff]  ;;  %v1987_v43 = vld [vmem:[%s3333_s6 + $0x30] sm:$0xff]  ;;  %v1988_v44 = vld [vmem:[%s3333_s6 + $0x38] sm:$0xff] }
 0x780   :  { %2509 = vpush %v968_v45  ;;  %v983_v47 = vrot.slane %v982_v46, 1 }
 0x782   :  { %v984_v49 = vadd.f32 %v983_v47, %v982_v46 }
 0x784   :  { %2511 = vpush %v984_v49 }
 0x7b1   :  { %s2510_s5 = spop %2509 }
 0x7b2   :  { %s986_s11 = smul.f32 0.001953125, %s2510_s5 }
 0x7b4   :  { %v991_v52 = vstv %s986_s11  ;;  %s988_s20 = smul.f32 %s986_s11, %s986_s11 }
 0x7b5   :  { %s2512_s4 = spop %2511  ;;  %v992_v53 = vsub.f32 %v939_v23, %v991_v52  ;;  %v993_v54 = vsub.f32 %v2272_v3, %v991_v52  ;;  %v994_v55 = vsub.f32 %v949_v28, %v991_v52  ;;  %v995_v56 = vsub.f32 %v2275_v26, %v991_v52 }
 0x7b6   :  { %s987_s23 = smul.f32 0.001953125, %s2512_s4 }
 0x7b8   :  { %s989_s0 = ssub.f32 %s987_s23, %s988_s20 }
 0x7ba   :  { %s990_s19 = smax.f32 %s2816_s16, %s989_s0 }
 0x7bb   :  { %s996_s24 = sadd.f32 1e-05, %s990_s19 }
 0x7bd   :  { %v997_v57 = vstv %s996_s24 }
 0x7be   :  { %2562 = vrsqrt.f32 %v997_v57 }
 0x7c8   :  { %v2563_v58 = vpop.eup %2562 }
 0x7c9   :  { %2513 = vpush %v2563_v58 }
 0x7fa   :  { %s2514_s25 = spop %2513 }
 0x7fb   :  { %v1000_v59 = vstv %s2514_s25 }
 0x7fc   :  { %v1001_v60 = vmul.f32 %v1000_v59, %v992_v53  ;;  %v1002_v61 = vmul.f32 %v1000_v59, %v993_v54  ;;  %v1003_v62 = vmul.f32 %v1000_v59, %v994_v55  ;;  %v1004_v63 = vmul.f32 %v1000_v59, %v995_v56 }
 0x7fe   :  { %v1005_v1 = vmax.f32 %v1001_v60, 0.0  ;;  %v1006_v2 = vmax.f32 %v1002_v61, 0.0  ;;  %v1007_v3 = vmax.f32 %v1003_v62, 0.0  ;;  %v1008_v22 = vmax.f32 %v1004_v63, 0.0 }
 0x800   :  { %v2455_v23 = vpack.c.bf16 %v1006_v2, %v1005_v1  ;;  %v2459_v24 = vpack.c.bf16 %v1008_v22, %v1007_v3  ;;  %v1333_v22 = vld [vmem:[#allocation10 + $0x10] sm:$0xff] }
 0x802   :  { %2456 = vmatprep.subr.bf16.mxu0 %v2455_v23 }
 0x803   :  { %2458 = vmatpush3.bf16.msra.mxu0 %v2455_v23 }
 0x804   :  { %2460 = vmatprep.subr.bf16.mxu0 %v2459_v24 }
 0x807   :  { %2462 = vmatpush3.bf16.msra.mxu0 %v2459_v24 }
 0x808   :  { %2307 = vmatprep.subr.bf16.mxu0 %v2814_v0 }
 0x80a   :  { %2285 = vmatmul.mubr.msk.f32.vlgmr.msra.gmra.mrb[10].mxu0 %vm454_vm2, %v1010_v25 }
 0x80b   :  { %2323 = vmatprep.mubr.msk.bf16.mxu0 %vm2815_vm1, %v2814_v0 }
 0x810   :  { %2308 = vmatpush3.bf16.xpose.msra.mxu0 %v3028_v5 }
 0x811   :  { %2309 = vmatprep.subr.bf16.mxu0 %v2814_v0 }
 0x818   :  { %2310 = vmatpush3.bf16.xpose.msra.mxu0 %v3036_v7 }
 0x819   :  { %2311 = vmatprep.subr.bf16.mxu0 %v2814_v0 }
 0x820   :  { %2312 = vmatpush3.bf16.xpose.msra.mxu0 %v3044_v9 }
 0x821   :  { %2313 = vmatprep.subr.bf16.mxu0 %v2814_v0 }
 0x828   :  { %2314 = vmatpush3.bf16.xpose.msra.mxu0 %v3052_v11 }
 0x829   :  { %2315 = vmatprep.subr.bf16.mxu0 %v2814_v0 }
 0x830   :  { %2316 = vmatpush3.bf16.xpose.msra.mxu0 %v3060_v13 }
 0x831   :  { %2317 = vmatprep.subr.bf16.mxu0 %v2814_v0 }
 0x838   :  { %2318 = vmatpush3.bf16.xpose.msra.mxu0 %v3068_v15 }
 0x839   :  { %2319 = vmatprep.subr.bf16.mxu0 %v2814_v0 }
 0x840   :  { %2320 = vmatpush3.bf16.xpose.msra.mxu0 %v3076_v17 }
 0x841   :  { %2321 = vmatprep.subr.bf16.mxu0 %v2814_v0 }
 0x848   :  { %2322 = vmatpush3.bf16.xpose.msra.mxu0 %v3084_v19 }
 0x8dd   :  { %v2286_v26 = vpop.f32.mrb[10].mxu0 }
 0x8de   :  { %v1093_v27 = vmul.f32 0.1, %v2286_v26  ;;  %v1083_v28 = vpop.f32.mrb[11].mxu0 }
 0x8df   :  { %v1092_v29 = vmul.f32 0.1, %v1083_v28 }
 0x8e0   :  { %v3208_v30 = vadd.f32 %v3091_v20, %v1093_v27 }
 0x8e1   :  { %v3211_v31 = vadd.f32 %v1092_v29, %v3093_v21 }
 0x8e3   :  { %v1096_v32 = vpack.c.bf16 %v3208_v30, %v3211_v31 }
 0x8e5   :  { %2304 = vmatmul.mubr.bf16.vlgmr.msra.gmra.mrb[16].mxu1 %v1096_v32  ;;  %2324 = vmatmul.mubr.bf16.vlgmr.msra.gmra.mrb[16].mxu0 %v1096_v32 }
 0x8e6   :  { %2335 = vmatprep.mubr.msk.f32.mxu1 %vm454_vm2, %v1985_v33  ;;  %2349 = vmatprep.mubr.msk.f32.mxu0 %vm454_vm2, %v1333_v22 }
 0x9b8   :  { %v1131_v34 = vpop.f32.mrb[16].mxu1  ;;  %v1172_v35 = vpop.f32.mrb[16].mxu0 }
 0x9b9   :  { %v2305_v36 = vpop.f32.mrb[17].mxu1  ;;  %v2325_v37 = vpop.f32.mrb[17].mxu0 }
 0x9ba   :  { %v1134_v20 = vpop.f32.mrb[18].mxu1  ;;  %v1175_v38 = vpop.f32.mrb[18].mxu0 }
 0x9bb   :  { %v2463_v39 = vpack.c.bf16 %v1134_v20, %v1131_v34  ;;  %v2467_v21 = vpack.c.bf16 %v1175_v38, %v1172_v35  ;;  %v2306_v40 = vpop.f32.mrb[19].mxu1  ;;  %v2326_v41 = vpop.f32.mrb[19].mxu0 }
 0x9bc   :  { %v1334_v41 = vld [vmem:[#allocation10 + $0x18] sm:$0xff] }
 0x9bd   :  { %2464 = vmatprep.subr.bf16.mxu1 %v2463_v39 }
 0x9be   :  { %2466 = vmatpush3.bf16.msra.mxu1 %v2463_v39 }
 0x9bf   :  { %2468 = vmatprep.subr.bf16.mxu1 %v2467_v21 }
 0x9c2   :  { %2470 = vmatpush3.bf16.msra.mxu1 %v2467_v21 }
 0x9c3   :  { %2352 = vmatprep.subr.bf16.mxu1 %v2814_v0 }
 0x9c5   :  { %2336 = vmatmul.mubr.msk.f32.vlgmr.msra.gmra.mrb[20].mxu1 %vm454_vm2, %v1986_v42 }
 0x9c6   :  { %2338 = vmatprep.mubr.msk.f32.mxu1 %vm454_vm2, %v1987_v43  ;;  %2353 = vmatpush3.bf16.msra.mxu1 %v3024_v4 }
 0x9c7   :  { %2354 = vmatprep.subr.bf16.mxu1 %v2814_v0 }
 0x9c9   :  { %2339 = vmatmul.mubr.msk.f32.gmra.mrb[22].mxu1 %vm454_vm2, %v1988_v44 }
 0x9ca   :  { %2355 = vmatpush3.bf16.msra.mxu1 %v3031_v6  ;;  %2368 = vmatprep.mubr.msk.bf16.mxu1 %vm2815_vm1, %v2814_v0 }
 0x9cb   :  { %2356 = vmatprep.subr.bf16.mxu1 %v2814_v0 }
 0x9ce   :  { %2357 = vmatpush3.bf16.msra.mxu1 %v3039_v8 }
 0x9cf   :  { %2358 = vmatprep.subr.bf16.mxu1 %v2814_v0 }
 0x9d2   :  { %2359 = vmatpush3.bf16.msra.mxu1 %v3047_v10 }
 0x9d3   :  { %2360 = vmatprep.subr.bf16.mxu1 %v2814_v0 }
 0x9d6   :  { %2361 = vmatpush3.bf16.msra.mxu1 %v3055_v12 }
 0x9d7   :  { %2362 = vmatprep.subr.bf16.mxu1 %v2814_v0 }
 0x9da   :  { %2363 = vmatpush3.bf16.msra.mxu1 %v3063_v14 }
 0x9db   :  { %2364 = vmatprep.subr.bf16.mxu1 %v2814_v0 }
 0x9de   :  { %2365 = vmatpush3.bf16.msra.mxu1 %v3071_v16 }
 0x9df   :  { %2366 = vmatprep.subr.bf16.mxu1 %v2814_v0 }
 0x9e2   :  { %2367 = vmatpush3.bf16.msra.mxu1 %v3079_v18 }
 0xa98   :  { %v2337_v4 = vpop.f32.mrb[20].mxu1 }
 0xa99   :  { %v1294_v6 = vmul.f32 %v2337_v4, %v2337_v4  ;;  %v1262_v8 = vpop.f32.mrb[21].mxu1 }
 0xa9a   :  { %v1281_v10 = vadd.f32 %v2337_v4, %v1262_v8  ;;  %v1293_v45 = vmul.f32 %v1262_v8, %v1262_v8 }
 0xa9c   :  { %v2340_v46 = vpop.f32.mrb[22].mxu1  ;;  %v1297_v47 = vadd.f32 %v1294_v6, %v1293_v45 }
 0xa9d   :  { %v1272_v12 = vpop.f32.mrb[23].mxu1  ;;  %v1296_v14 = vmul.f32 %v2340_v46, %v2340_v46 }
 0xa9e   :  { %v1295_v49 = vmul.f32 %v1272_v12, %v1272_v12  ;;  %v1282_v51 = vadd.f32 %v1281_v10, %v1272_v12 }
 0xaa0   :  { %v1283_v52 = vadd.f32 %v2340_v46, %v1282_v51  ;;  %v1298_v53 = vadd.f32 %v1297_v47, %v1295_v49  ;;  %v1507_v47 = vld [vmem:[#allocation11 + $0x38] sm:$0xff] }
 0xaa2   :  { %1284 = vadd.xlane.f32.xlu0 %v1283_v52  ;;  %v1299_v54 = vadd.f32 %v1298_v53, %v1296_v14 }
 0xaa4   :  { %1300 = vadd.xlane.f32.xlu1 %v1299_v54 }
 0xb2f   :  { %v1285_v16 = vpop.xlane.xlu0 %1284 }
 0xb30   :  { %v1286_v55 = vrot.slane %v1285_v16, 4 }
 0xb31   :  { %v1301_v56 = vpop.xlane.xlu1 %1300 }
 0xb32   :  { %v1287_v18 = vadd.f32 %v1286_v55, %v1285_v16  ;;  %v1302_v57 = vrot.slane %v1301_v56, 4 }
 0xb34   :  { %v1288_v58 = vrot.slane %v1287_v18, 2  ;;  %v1303_v59 = vadd.f32 %v1302_v57, %v1301_v56 }
 0xb36   :  { %v1304_v60 = vrot.slane %v1303_v59, 2  ;;  %v1289_v61 = vadd.f32 %v1288_v58, %v1287_v18 }
 0xb38   :  { %v1290_v62 = vrot.slane %v1289_v61, 1  ;;  %v1305_v63 = vadd.f32 %v1304_v60, %v1303_v59 }
 0xb3a   :  { %v1291_v1 = vadd.f32 %v1290_v62, %v1289_v61  ;;  %v1306_v2 = vrot.slane %v1305_v63, 1 }
 0xb3c   :  { %2515 = vpush %v1291_v1  ;;  %v1307_v3 = vadd.f32 %v1306_v2, %v1305_v63 }
 0xb3e   :  { %2517 = vpush %v1307_v3 }
 0xb6d   :  { %s2516_s6 = spop %2515 }
 0xb6e   :  { %s1309_s2 = smul.f32 0.0013020834, %s2516_s6 }
 0xb6f   :  { %s2518_s1 = spop %2517 }
 0xb70   :  { %s1311_s26 = smul.f32 %s1309_s2, %s1309_s2  ;;  %v1314_v23 = vstv %s1309_s2 }
 0xb71   :  { %s1310_s9 = smul.f32 0.0013020834, %s2518_s1  ;;  %v1315_v24 = vsub.f32 %v1262_v8, %v1314_v23  ;;  %v1316_v25 = vsub.f32 %v2337_v4, %v1314_v23  ;;  %v1317_v26 = vsub.f32 %v1272_v12, %v1314_v23  ;;  %v1318_v27 = vsub.f32 %v2340_v46, %v1314_v23  ;;  %v1506_v46 = vld [vmem:[#allocation11 + $0x30] sm:$0xff] }
 0xb73   :  { %s1312_s28 = ssub.f32 %s1310_s9, %s1311_s26 }
 0xb75   :  { %s1313_s18 = smax.f32 %s2816_s16, %s1312_s28 }
 0xb76   :  { %s1319_s22 = sadd.f32 1e-05, %s1313_s18 }
 0xb78   :  { %v1320_v28 = vstv %s1319_s22 }
 0xb79   :  { %2564 = vrsqrt.f32 %v1320_v28 }
 0xb83   :  { %v2565_v29 = vpop.eup %2564 }
 0xb84   :  { %2519 = vpush %v2565_v29  ;;  %v1657_v29 = vld [vmem:[#allocation13 + $0x10] sm:$0xff] }
 0xbb5   :  { %s2520_s5 = spop %2519 }
 0xbb6   :  { %v1323_v32 = vstv %s2520_s5 }
 0xbb7   :  { %v1324_v33 = vmul.f32 %v1323_v32, %v1315_v24  ;;  %v1325_v34 = vmul.f32 %v1323_v32, %v1316_v25  ;;  %v1326_v35 = vmul.f32 %v1323_v32, %v1317_v26  ;;  %v1327_v36 = vmul.f32 %v1323_v32, %v1318_v27 }
 0xbb9   :  { %v1328_v37 = vmax.f32 %v1324_v33, 0.0  ;;  %v1329_v20 = vmax.f32 %v1325_v34, 0.0  ;;  %v1330_v38 = vmax.f32 %v1326_v35, 0.0  ;;  %v1331_v39 = vmax.f32 %v1327_v36, 0.0 }
 0xbbb   :  { %v2471_v21 = vpack.c.bf16 %v1329_v20, %v1328_v37  ;;  %v2475_v40 = vpack.c.bf16 %v1331_v39, %v1330_v38 }
 0xbbd   :  { %2472 = vmatprep.subr.bf16.mxu0 %v2471_v21 }
 0xbbe   :  { %2474 = vmatpush3.bf16.msra.mxu0 %v2471_v21 }
 0xbbf   :  { %2476 = vmatprep.subr.bf16.mxu0 %v2475_v40 }
 0xbc2   :  { %2478 = vmatpush3.bf16.msra.mxu0 %v2475_v40 }
 0xbc3   :  { %2372 = vmatprep.subr.bf16.mxu0 %v2814_v0 }
 0xbc5   :  { %2350 = vmatmul.mubr.msk.f32.vlgmr.msra.gmra.mrb[20].mxu0 %vm454_vm2, %v1334_v41 }
 0xbc6   :  { %2373 = vmatpush3.bf16.msra.mxu0 %v3028_v5  ;;  %2388 = vmatprep.mubr.msk.bf16.mxu0 %vm2815_vm1, %v2814_v0 }
 0xbc7   :  { %2374 = vmatprep.subr.bf16.mxu0 %v2814_v0 }
 0xbca   :  { %2375 = vmatpush3.bf16.msra.mxu0 %v3036_v7 }
 0xbcb   :  { %2376 = vmatprep.subr.bf16.mxu0 %v2814_v0 }
 0xbce   :  { %2377 = vmatpush3.bf16.msra.mxu0 %v3044_v9 }
 0xbcf   :  { %2378 = vmatprep.subr.bf16.mxu0 %v2814_v0 }
 0xbd2   :  { %2379 = vmatpush3.bf16.msra.mxu0 %v3052_v11 }
 0xbd3   :  { %2380 = vmatprep.subr.bf16.mxu0 %v2814_v0 }
 0xbd6   :  { %2381 = vmatpush3.bf16.msra.mxu0 %v3060_v13 }
 0xbd7   :  { %2382 = vmatprep.subr.bf16.mxu0 %v2814_v0 }
 0xbda   :  { %2383 = vmatpush3.bf16.msra.mxu0 %v3068_v15  ;;  %v1504_v15 = vld [vmem:[#allocation11 + $0x20] sm:$0xff] }
 0xbdb   :  { %2384 = vmatprep.subr.bf16.mxu0 %v2814_v0 }
 0xbde   :  { %2385 = vmatpush3.bf16.msra.mxu0 %v3076_v17 }
 0xbdf   :  { %2386 = vmatprep.subr.bf16.mxu0 %v2814_v0 }
 0xbe2   :  { %2387 = vmatpush3.bf16.msra.mxu0 %v3084_v19 }
 0xc98   :  { %v2351_v5 = vpop.f32.mrb[20].mxu0 }
 0xc99   :  { %v1417_v7 = vmul.f32 0.1, %v2351_v5  ;;  %v1407_v9 = vpop.f32.mrb[21].mxu0 }
 0xc9a   :  { %v1416_v11 = vmul.f32 0.1, %v1407_v9 }
 0xc9b   :  { %v1419_v42 = vadd.f32 %v1417_v7, %v3158_v48 }
 0xc9c   :  { %v1418_v13 = vadd.f32 %v1416_v11, %v3160_v50  ;;  %v1505_v50 = vld [vmem:[#allocation11 + $0x28] sm:$0xff] }
 0xc9e   :  { %v3272_v43 = vpack.c.bf16 %v1419_v42, %v1418_v13 }
 0xca0   :  { %2369 = vmatmul.mubr.bf16.vlgmr.msra.gmra.mrb[24].mxu1 %v3272_v43  ;;  %2389 = vmatmul.mubr.bf16.vlgmr.msra.gmra.mrb[24].mxu0 %v3272_v43 }
 0xca1   :  { %2400 = vmatprep.mubr.msk.f32.mxu1 %vm454_vm2, %v1504_v15  ;;  %2414 = vmatprep.mubr.msk.f32.mxu0 %vm454_vm2, %v1657_v29  ;;  %v1658_v15 = vld [vmem:[#allocation13 + $0x18] sm:$0xff] }
 0xd73   :  { %v1455_v0 = vpop.f32.mrb[24].mxu1  ;;  %v1496_v17 = vpop.f32.mrb[24].mxu0 }
 0xd74   :  { %v2370_v19 = vpop.f32.mrb[25].mxu1  ;;  %v2390_v44 = vpop.f32.mrb[25].mxu0 }
 0xd75   :  { %v1458_v4 = vpop.f32.mrb[26].mxu1  ;;  %v1499_v6 = vpop.f32.mrb[26].mxu0  ;;  %v1831_v19 = vld [vmem:[#allocation14 + $0x8] sm:$0xf] }
 0xd76   :  { %v2479_v8 = vpack.c.bf16 %v1458_v4, %v1455_v0  ;;  %v2483_v10 = vpack.c.bf16 %v1499_v6, %v1496_v17  ;;  %v2371_v48 = vpop.f32.mrb[27].mxu1  ;;  %v2391_v45 = vpop.f32.mrb[27].mxu0  ;;  %v1744_v0 = vld [vmem:[%s3337_s10] sm:$0xff]  ;;  %v1830_v17 = vld [vmem:[#allocation14] sm:$0xff] }
 0xd77   :  { %v1745_v45 = vld [vmem:[%s3337_s10 + $0x8] sm:$0x3] }
 0xd78   :  { %2480 = vmatprep.subr.bf16.mxu1 %v2479_v8 }
 0xd79   :  { %2482 = vmatpush3.bf16.msra.mxu1 %v2479_v8 }
 0xd7a   :  { %2484 = vmatprep.subr.bf16.mxu1 %v2483_v10 }
 0xd7d   :  { %2486 = vmatpush3.bf16.msra.mxu1 %v2483_v10 }
 0xd80   :  { %2401 = vmatmul.mubr.msk.f32.vlgmr.msra.gmra.mrb[28].mxu1 %vm454_vm2, %v1505_v50 }
 0xd81   :  { %2403 = vmatprep.mubr.msk.f32.mxu1 %vm454_vm2, %v1506_v46 }
 0xd84   :  { %2404 = vmatmul.mubr.msk.f32.gmra.mrb[30].mxu1 %vm454_vm2, %v1507_v47 }
 0xd85   :  { %2421 = vmatprep.mubr.msk.f32.mxu1 %vm1746_vm5, %v1744_v0 }
 0xe53   :  { %v2402_v12 = vpop.f32.mrb[28].mxu1 }
 0xe54   :  { %v1618_v49 = vmul.f32 %v2402_v12, %v2402_v12  ;;  %v1586_v51 = vpop.f32.mrb[29].mxu1 }
 0xe55   :  { %v1605_v52 = vadd.f32 %v2402_v12, %v1586_v51  ;;  %v1617_v14 = vmul.f32 %v1586_v51, %v1586_v51 }
 0xe57   :  { %v2405_v53 = vpop.f32.mrb[30].mxu1  ;;  %v1621_v54 = vadd.f32 %v1618_v49, %v1617_v14 }
 0xe58   :  { %v1596_v16 = vpop.f32.mrb[31].mxu1  ;;  %v1620_v57 = vmul.f32 %v2405_v53, %v2405_v53 }
 0xe59   :  { %v1619_v55 = vmul.f32 %v1596_v16, %v1596_v16  ;;  %v1606_v56 = vadd.f32 %v1605_v52, %v1596_v16 }
 0xe5b   :  { %v1607_v18 = vadd.f32 %v2405_v53, %v1606_v56  ;;  %v1622_v58 = vadd.f32 %v1621_v54, %v1619_v55 }
 0xe5d   :  { %1608 = vadd.xlane.f32.xlu0 %v1607_v18  ;;  %v1623_v59 = vadd.f32 %v1622_v58, %v1620_v57 }
 0xe5f   :  { %1624 = vadd.xlane.f32.xlu1 %v1623_v59 }
 0xeea   :  { %v1609_v60 = vpop.xlane.xlu0 %1608 }
 0xeeb   :  { %v1610_v61 = vrot.slane %v1609_v60, 4 }
 0xeec   :  { %v1625_v62 = vpop.xlane.xlu1 %1624 }
 0xeed   :  { %v1611_v63 = vadd.f32 %v1610_v61, %v1609_v60  ;;  %v1626_v1 = vrot.slane %v1625_v62, 4 }
 0xeef   :  { %v1612_v2 = vrot.slane %v1611_v63, 2  ;;  %v1627_v3 = vadd.f32 %v1626_v1, %v1625_v62 }
 0xef1   :  { %v1613_v22 = vadd.f32 %v1612_v2, %v1611_v63  ;;  %v1628_v23 = vrot.slane %v1627_v3, 2 }
 0xef3   :  { %v1629_v24 = vadd.f32 %v1628_v23, %v1627_v3  ;;  %v1614_v25 = vrot.slane %v1613_v22, 1 }
 0xef5   :  { %v1615_v26 = vadd.f32 %v1614_v25, %v1613_v22  ;;  %v1630_v27 = vrot.slane %v1629_v24, 1 }
 0xef7   :  { %2521 = vpush %v1615_v26  ;;  %v1631_v28 = vadd.f32 %v1630_v27, %v1629_v24 }
 0xef9   :  { %2523 = vpush %v1631_v28 }
 0xf28   :  { %s2522_s11 = spop %2521 }
 0xf29   :  { %s1633_s20 = smul.f32 0.001953125, %s2522_s11 }
 0xf2a   :  { %s2524_s4 = spop %2523 }
 0xf2b   :  { %s1635_s23 = smul.f32 %s1633_s20, %s1633_s20  ;;  %v1638_v32 = vstv %s1633_s20 }
 0xf2c   :  { %s1634_s0 = smul.f32 0.001953125, %s2524_s4  ;;  %v1639_v33 = vsub.f32 %v1586_v51, %v1638_v32  ;;  %v1640_v34 = vsub.f32 %v2402_v12, %v1638_v32  ;;  %v1641_v35 = vsub.f32 %v1596_v16, %v1638_v32  ;;  %v1642_v36 = vsub.f32 %v2405_v53, %v1638_v32 }
 0xf2e   :  { %s1636_s19 = ssub.f32 %s1634_s0, %s1635_s23 }
 0xf30   :  { %s1637_s24 = smax.f32 %s2816_s16, %s1636_s19 }
 0xf31   :  { %s1643_s25 = sadd.f32 1e-05, %s1637_s24 }
 0xf33   :  { %v1644_v37 = vstv %s1643_s25 }
 0xf34   :  { %2566 = vrsqrt.f32 %v1644_v37 }
 0xf3e   :  { %v2567_v20 = vpop.eup %2566 }
 0xf3f   :  { %2525 = vpush %v2567_v20 }
 0xf70   :  { %s2526_s8 = spop %2525 }
 0xf71   :  { %v1647_v38 = vstv %s2526_s8 }
 0xf72   :  { %v1648_v39 = vmul.f32 %v1647_v38, %v1639_v33  ;;  %v1649_v21 = vmul.f32 %v1647_v38, %v1640_v34  ;;  %v1650_v40 = vmul.f32 %v1647_v38, %v1641_v35  ;;  %v1651_v41 = vmul.f32 %v1647_v38, %v1642_v36 }
 0xf74   :  { %v1652_v5 = vmax.f32 %v1648_v39, 0.0  ;;  %v1653_v7 = vmax.f32 %v1649_v21, 0.0  ;;  %v1654_v9 = vmax.f32 %v1650_v40, 0.0  ;;  %v1655_v11 = vmax.f32 %v1651_v41, 0.0 }
 0xf76   :  { %v2487_v42 = vpack.c.bf16 %v1653_v7, %v1652_v5  ;;  %v2491_v13 = vpack.c.bf16 %v1655_v11, %v1654_v9 }
 0xf78   :  { %2488 = vmatprep.subr.bf16.mxu0 %v2487_v42 }
 0xf79   :  { %2490 = vmatpush3.bf16.msra.mxu0 %v2487_v42 }
 0xf7a   :  { %2492 = vmatprep.subr.bf16.mxu0 %v2491_v13 }
 0xf7d   :  { %2494 = vmatpush3.bf16.msra.mxu0 %v2491_v13 }
 0xf7e   :  { %2500 = vmatprep.subr.bf16.mxu0 %v3272_v43 }
 0xf80   :  { %2415 = vmatmul.mubr.msk.f32.vlgmr.msra.gmra.mrb[22].mxu0 %vm454_vm2, %v1658_v15 }
 0xf81   :  { %2502 = vmatpush3.bf16.msra.mxu0 %v3272_v43  ;;  %2428 = vmatprep.mubr.msk.f32.mxu0 %vm1746_vm5, %v1830_v17 }
 0xf84   :  { %2429 = vmatmul.mubr.msk.f32.vlgmr.msra.gmra.mrb[28].mxu0 %vm1746_vm5, %v1831_v19 }
0x1053   :  { %v2416_v44 = vpop.f32.mrb[22].mxu0 }
0x1054   :  { %v1741_v4 = vmul.f32 0.1, %v2416_v44  ;;  %v1731_v6 = vpop.f32.mrb[23].mxu0 }
0x1055   :  { %v1740_v8 = vmul.f32 0.1, %v1731_v6 }
0x1056   :  { %v1743_v10 = vadd.f32 %v1741_v4, %v3208_v30 }
0x1057   :  { %v1742_v43 = vadd.f32 %v1740_v8, %v3211_v31  ;;  %v2430_v50 = vpop.f32.mrb[28].mxu0 }
0x1058   :  { %1914 = vst [vmem:[#allocation17 + $0x8] sm:$0xf] %v2430_v50  ;;  %v1904_v46 = vpop.f32.mrb[29].mxu0 }
0x1059   :  { %v2495_v48 = vpack.c.bf16 %v1743_v10, %v1742_v43  ;;  %1913 = vst [vmem:[#allocation17] sm:$0xff] %v1904_v46 }
0x105b   :  { %2496 = vmatprep.subr.bf16.mxu1 %v2495_v48 }
0x105c   :  { %2498 = vmatpush3.bf16.msra.mxu1 %v2495_v48 }
0x105f   :  { %2422 = vmatmul.mubr.msk.f32.vlgmr.msra.gmra.mrb[32].mxu1 %vm1746_vm5, %v1745_v45 }
0x1060   :  { %2755 = shalt.err (!%p2752_p12)
}
0x1061   :  { %s2756_s10 = scalar_lea.hbm %s3340_s13, 256 }
0x1062   :  { %p2757_p13 = scmp.ne.s32.totalorder %s3340_s13, %s2756_s10  ;;  %p2760_p0 = scmp.lt.u32.totalorder %s2756_s10, %s3340_s13 }
0x1064   :  { %p2762_p1 = pnand %p2760_p0, %p2757_p13 }
0x1066   :  { %2765 = shalt.err (!%p2762_p1)
}
0x1067   :  { %1938 = dma.vmem_to_hbm [thread:$0]  %s1933_s3, 256, %s3340_s13, [#allocation18], %s2808_s21, %s2808_s21, %s2809_s29  }
0x1068   :  { %s2818_s22 = smov [#allocation16]  }
0x1069   :  { %s1920_s5 = sshll.u32 %s2818_s22, 4  ;;  %s1921_s5 = int_to_ptr.vmem [resolvable:$true] %s1920_s5 }
0x106a   :  { %s2766_s11 = scalar_lea.vmem %s1921_s5, 256  ;;  %p2771_p3 = scmp.lt.s32.totalorder %s1921_s5, %s1921_s5 }
0x106b   :  { %p2767_p2 = scmp.ne.s32.totalorder %s1921_s5, %s2766_s11  ;;  %p2772_p4 = scmp.lt.s32.totalorder %s2766_s11, %s2766_s11 }
0x106d   :  { %p2773_p5 = por %p2772_p4, %p2771_p3 }
0x106f   :  { %p2774_p6 = pnand %p2773_p5, %p2767_p2 }
0x1132   :  { %v2423_v30 = vpop.f32.mrb[32].mxu1 }
0x1133   :  { %1829 = vst [vmem:[#allocation16 + $0x8] sm:$0x3] %v2423_v30  ;;  %v1819_v31 = vpop.f32.mrb[33].mxu1 }
0x1134   :  { %1828 = vst [vmem:[#allocation16] sm:$0xff] %v1819_v31 }
0x1135   :  { %2777 = shalt.err (!%p2774_p6)
}
0x1136   :  { %s2778_s23 = scalar_lea.hbm %s3339_s12, 256 }
0x1137   :  { %p2779_p7 = scmp.ne.s32.totalorder %s3339_s12, %s2778_s23  ;;  %p2782_p8 = scmp.lt.u32.totalorder %s2778_s23, %s3339_s12 }
0x1139   :  { %p2784_p9 = pnand %p2782_p8, %p2779_p7 }
0x113b   :  { %2787 = shalt.err (!%p2784_p9)
}
0x113c   :  { %1926 = dma.vmem_to_hbm [thread:$0]  %s1921_s5, 256, %s3339_s12, [#allocation4], %s2808_s21, %s2808_s21, %s2809_s29  }
0x113d   :  { %2798 = dma.done.wait [#allocation4], 256  }
0x113e   :  { %2799 = vsyncadd [#allocation4], 4294967040 }
0x113f   :  { %2800 = dma.done.wait [#allocation18], 256  }
0x1140   :  { %2801 = vsyncadd [#allocation18], 4294967040 }
0x1141   :  { %1945 = vsyncpa [#allocation3], 1 }
0x1142   :  { %1946 = vsyncpa [#allocation6], 1 }
0x1143   :  { %1947 = vsyncpa [#allocation9], 1 }
0x1144   :  { %1948 = vsyncpa [#allocation12], 1 }
0x1145   :  { %1949 = vsyncpa [#allocation15], 1 }
0x1146   :  { %1950 = vsyncpa [#allocation4], 1 }
0x1147   :  { %1951 = vsyncpa [#allocation18], 1 }

</bundles_post_ra>
